<compile_context>
chip_gen: v6e
topology: v6e:2x2x1
jax: 0.10.0
libtpu: 0.0.40
codegen_flags: <defaults>
</compile_context>

<pallas_src>
import functools

import jax
import jax.numpy as jnp
from jax import lax
from jax.experimental import pallas as pl
from jax.experimental.pallas import tpu as pltpu

EPS = 1e-5


# -----------------------------------------------------------------------------
# Kernels. Activations live in a lane-dense (rows, W*C) layout == flat NHWC.
# -----------------------------------------------------------------------------

def _conv3x3_band(v_f32, band_ref, H):
    """3x3 SAME conv (bias=False) on a (RB, W*C) block holding whole images.

    dx taps + width zero-padding are baked into the (W*C, W*C) bf16 band
    matrices; dy row shifts use pltpu.roll (XLU slot) plus an in-kernel iota
    mask so rows never wrap across image boundaries (RB is a multiple of H).
    """
    RB, WC = v_f32.shape
    row = lax.broadcasted_iota(jnp.int32, (RB, WC), 0)          # in-kernel masks
    up = jnp.where((row % H) != 0,
                   pltpu.roll(v_f32, shift=1, axis=0), 0.0)      # row y-1
    dn = jnp.where((row % H) != H - 1,
                   pltpu.roll(v_f32, shift=RB - 1, axis=0), 0.0)  # row y+1
    # bf16 operands, f32 accumulation: MXU-native on v5e/v6e/v7x.
    acc = jnp.dot(up.astype(jnp.bfloat16), band_ref[0],
                  preferred_element_type=jnp.float32)
    acc = acc + jnp.dot(v_f32.astype(jnp.bfloat16), band_ref[1],
                        preferred_element_type=jnp.float32)
    acc = acc + jnp.dot(dn.astype(jnp.bfloat16), band_ref[2],
                        preferred_element_type=jnp.float32)
    return acc


def _stats_kernel(x_ref, stat_ref):
    """Pass A: per-row-block partial BN stats (lane-wise sum, sum of squares)."""
    v = x_ref[...]
    stat_ref[...] = jnp.concatenate(
        [jnp.sum(v, axis=0, keepdims=True),
         jnp.sum(v * v, axis=0, keepdims=True)], axis=0)


def _apply1_kernel(x_ref, sc1_ref, sh1_ref, a1_ref, band1_ref,
                   h1_ref, stat2_ref, *, H):
    """Pass B: BN1 affine + PReLU1 + conv1 on one row block + partial BN2 stats."""
    y = x_ref[...] * sc1_ref[...] + sh1_ref[...]            # BN1 (folded affine)
    a = a1_ref[0, 0]                                         # PReLU shared slope
    y = jnp.where(y >= 0.0, y, a * y)
    h = _conv3x3_band(y, band1_ref, H)                       # conv1 (f32 result)
    h1_ref[...] = h
    stat2_ref[...] = jnp.concatenate(
        [jnp.sum(h, axis=0, keepdims=True),
         jnp.sum(h * h, axis=0, keepdims=True)], axis=0)


def _apply2_kernel(x_ref, h1_ref, sc2_ref, sh2_ref, a2_ref, band2_ref,
                   out_ref, *, H):
    """Pass C: BN2 affine + PReLU2 + conv2 + residual on one row block."""
    y = h1_ref[...] * sc2_ref[...] + sh2_ref[...]            # BN2
    a = a2_ref[0, 0]
    y = jnp.where(y >= 0.0, y, a * y)                        # PReLU2
    h = _conv3x3_band(y, band2_ref, H)                       # conv2
    out_ref[...] = (h + x_ref[...]).astype(out_ref.dtype)    # residual; x read late


# -----------------------------------------------------------------------------
# One-time weight transform and small wrapper-side helpers.
# -----------------------------------------------------------------------------

def build_band_matrices(w_oihw, W):
    """OIHW (Cout,Cin,3,3) conv weight -> (3, W*Cin, W*Cout) bf16 band matrices.

    band[dy][xi*Cin+ci, xo*Cout+co] = w[co, ci, dy, xi-xo+1] when |xi-xo| <= 1,
    else 0 (the zeros also realize padding=1 along the width).
    """
    # TODO(synk): for W*C >> 256, width-tile the bands (block-banded
    # (Wt*C + 2C, Wt*C) tiles with a C-lane halo, Wt*C ~= 256) or use per-tap
    # (C,C) matmuls with lane rolls once C >= 128; at this toy size W*C == 256
    # already matches the recommended MXU contraction depth.
    w_hwio = jnp.transpose(w_oihw, (2, 3, 1, 0))             # (3, 3, Cin, Cout)
    C_in, C_out = w_hwio.shape[2], w_hwio.shape[3]
    xi = jnp.arange(W)[:, None]
    xo = jnp.arange(W)[None, :]
    dx = xi - xo + 1                                          # (W, W)
    valid = (dx >= 0) & (dx <= 2)
    dxc = jnp.clip(dx, 0, 2)
    bands = []
    for dy in range(3):
        sel = w_hwio[dy][dxc]                                 # (W, W, Cin, Cout)
        sel = jnp.where(valid[:, :, None, None], sel, 0.0)
        bands.append(jnp.transpose(sel, (0, 2, 1, 3)).reshape(W * C_in, W * C_out))
    return jnp.stack(bands, axis=0).astype(jnp.bfloat16)      # bf16 MXU operands


def prepare_params(params, W):
    """One-time transform of module parameters into kernel operands."""
    g1, b1, a1, w1, g2, b2, a2, w2 = params
    return (g1.astype(jnp.float32), b1.astype(jnp.float32),
            a1.reshape(1, 1).astype(jnp.float32), build_band_matrices(w1, W),
            g2.astype(jnp.float32), b2.astype(jnp.float32),
            a2.reshape(1, 1).astype(jnp.float32), build_band_matrices(w2, W))


def _bn_affine_from_stats(stat_blocks, gamma, beta, count, W, C):
    """(nb, 2, W*C) partial lane sums -> lane-dense (1, W*C) BN scale/shift."""
    s = stat_blocks.sum(axis=0).reshape(2, W, C).sum(axis=1)  # (2, C)
    mean = s[0] / count
    var = s[1] / count - mean * mean       # biased variance (training-mode BN)
    # TODO(synk): single-pass E[x^2]-E[x]^2 variance; use a mean-shifted second
    # pass if inputs are ever far from zero-centered.
    scale = gamma * lax.rsqrt(var + EPS)
    shift = beta - mean * scale
    return (jnp.tile(scale, W).reshape(1, W * C),
            jnp.tile(shift, W).reshape(1, W * C))


def _pick_block_images(N, H, WC, vmem_budget_bytes=45 * 2**20):
    """Largest whole-image row block dividing N that fits the VMEM budget.

    ~45 MiB keeps headroom on v7x (64 MiB physical VMEM); v5e/v6e (128 MiB)
    could take larger blocks, but blocks must stay whole-image multiples of H
    so the rolls/masks remain block-local.
    """
    band_bytes = 3 * WC * WC * 2                   # one bf16 band tensor
    best = 1
    for imgs in range(1, N + 1):
        if N % imgs:
            continue
        rb = imgs * H
        # double-buffered x/h1/out blocks + ~3 live f32 temporaries + 2 bands
        step_bytes = (3 * 2 + 3) * rb * WC * 4 + 2 * band_bytes
        if step_bytes <= vmem_budget_bytes:
            best = imgs
    return best


# -----------------------------------------------------------------------------
# Forward (NHWC in / NHWC out; (N*H, W*C) lane-dense view is a free reshape).
# -----------------------------------------------------------------------------

def resblock_forward_nhwc(x_nhwc, prepped, block_images=None):
    """x: (N, H, W, C) float32. Returns block(x) + x, (N, H, W, C) float32."""
    N, H, W, C = x_nhwc.shape
    R, WC = N * H, W * C
    g1, b1, a1, band1, g2, b2, a2, band2 = prepped

    if block_images is None:
        block_images = _pick_block_images(N, H, WC)
    assert N % block_images == 0, "row blocks must hold whole images"
    RB = block_images * H
    nb = R // RB

    x_ld = x_nhwc.reshape(R, WC)                   # NHWC is already lane-dense

    x_spec = pl.BlockSpec((RB, WC), lambda i: (i, 0))
    vec_spec = pl.BlockSpec((1, WC), lambda i: (0, 0))
    scal_spec = pl.BlockSpec((1, 1), lambda i: (0, 0))
    band_spec = pl.BlockSpec((3, WC, WC), lambda i: (0, 0, 0))
    stat_spec = pl.BlockSpec((None, 2, WC), lambda i: (i, 0, 0))
    par = pltpu.CompilerParams(dimension_semantics=("parallel",))

    io_bytes = R * WC * 4
    conv_flops = 2 * 3 * R * WC * WC

    # --- Pass A: BN1 batch statistics (per-block partial lane sums). ---------
    stats1 = pl.pallas_call(
        _stats_kernel,
        grid=(nb,),
        in_specs=[x_spec],
        out_specs=stat_spec,
        out_shape=jax.ShapeDtypeStruct((nb, 2, WC), jnp.float32),
        compiler_params=par,
        cost_estimate=pl.CostEstimate(flops=3 * R * WC, transcendentals=0,
                                      bytes_accessed=io_bytes + nb * 2 * WC * 4),
    )(x_ld)
    sc1, sh1 = _bn_affine_from_stats(stats1, g1, b1, R * W, W, C)

    # --- Pass B: BN1 + PReLU1 + conv1; emits h1 and partial BN2 statistics. --
    h1, stats2 = pl.pallas_call(
        functools.partial(_apply1_kernel, H=H),
        grid=(nb,),
        in_specs=[x_spec, vec_spec, vec_spec, scal_spec, band_spec],
        out_specs=(x_spec, stat_spec),
        out_shape=(jax.ShapeDtypeStruct((R, WC), jnp.float32),
                   jax.ShapeDtypeStruct((nb, 2, WC), jnp.float32)),
        compiler_params=par,
        cost_estimate=pl.CostEstimate(flops=conv_flops + 10 * R * WC,
                                      transcendentals=0,
                                      bytes_accessed=2 * io_bytes + band1.size * 2),
    )(x_ld, sc1, sh1, a1, band1)
    sc2, sh2 = _bn_affine_from_stats(stats2, g2, b2, R * W, W, C)

    # --- Pass C: BN2 + PReLU2 + conv2 + residual. -----------------------------
    out_ld = pl.pallas_call(
        functools.partial(_apply2_kernel, H=H),
        grid=(nb,),
        in_specs=[x_spec, x_spec, vec_spec, vec_spec, scal_spec, band_spec],
        out_specs=x_spec,
        out_shape=jax.ShapeDtypeStruct((R, WC), jnp.float32),
        compiler_params=par,
        cost_estimate=pl.CostEstimate(flops=conv_flops + 10 * R * WC,
                                      transcendentals=0,
                                      bytes_accessed=3 * io_bytes + band2.size * 2),
    )(x_ld, h1, sc2, sh2, a2, band2)

    return out_ld.reshape(N, H, W, C)


# -----------------------------------------------------------------------------
# Pure-JAX NCHW reference mirroring the PyTorch module (training-mode BN).
# -----------------------------------------------------------------------------

def ref_forward(x, params):
    g1, b1, a1, w1, g2, b2, a2, w2 = params

    def bn(v, g, b):
        mean = v.mean(axis=(0, 2, 3), keepdims=True)
        var = v.var(axis=(0, 2, 3), keepdims=True)   # biased, training-mode BN
        vh = (v - mean) / jnp.sqrt(var + EPS)
        return vh * g.reshape(1, -1, 1, 1) + b.reshape(1, -1, 1, 1)

    def prelu(v, a):
        return jnp.where(v >= 0, v, a * v)

    def conv(v, w_oihw):
        return jax.lax.conv_general_dilated(
            v, w_oihw, window_strides=(1, 1), padding="SAME",
            dimension_numbers=("NCHW", "OIHW", "NCHW"))

    h = conv(prelu(bn(x, g1, b1), a1), w1)
    h = conv(prelu(bn(h, g2, b2), a2), w2)
    return h + x


if __name__ == "__main__":
    N, C, H, W = 4, 16, 16, 16   # in_channels = 16 -> W*C = 256 lanes

    key = jax.random.PRNGKey(0)
    k = jax.random.split(key, 8)
    x = jax.random.normal(k[0], (N, C, H, W), jnp.float32)

    # Deterministic synthetic parameters (shapes per nn.Module __init__).
    g1 = 1.0 + 0.1 * jax.random.normal(k[1], (C,), jnp.float32)    # BN1 weight
    b1 = 0.1 * jax.random.normal(k[2], (C,), jnp.float32)          # BN1 bias
    a1 = jnp.array([0.25], jnp.float32)                            # PReLU1 slope
    w1 = 0.1 * jax.random.normal(k[3], (C, C, 3, 3), jnp.float32)  # Conv1 OIHW
    g2 = 1.0 + 0.1 * jax.random.normal(k[4], (C,), jnp.float32)    # BN2 weight
    b2 = 0.1 * jax.random.normal(k[5], (C,), jnp.float32)          # BN2 bias
    a2 = jnp.array([0.25], jnp.float32)                            # PReLU2 slope
    w2 = 0.1 * jax.random.normal(k[6], (C, C, 3, 3), jnp.float32)  # Conv2 OIHW

    params = (g1, b1, a1, w1, g2, b2, a2, w2)
    prepped = prepare_params(params, W)   # one-time weight -> bf16 band transform

    # Activations stay NHWC around the kernel (no extra HBM transpose passes);
    # this single transpose only adapts the PyTorch-convention NCHW test input.
    x_nhwc = jnp.transpose(x, (0, 2, 3, 1))

    # block_images=2 (-> 32-row blocks, 2 grid steps per pass) exercises the
    # row-blocked / pipelined path at this toy size; block_images=None
    # auto-sizes whole-image blocks against a ~45 MiB VMEM budget (v7x-safe).
    fwd = jax.jit(functools.partial(resblock_forward_nhwc, block_images=2))
    out_nhwc = jax.block_until_ready(fwd(x_nhwc, prepped))
    out = jnp.transpose(out_nhwc, (0, 3, 1, 2))

    ref = ref_forward(x, params)
    assert out.shape == (N, C, H, W)
    err = jnp.max(jnp.abs(out - ref))
    # bf16 MXU operands (f32 accumulation) -> slightly looser tolerance than f32.
    assert jnp.allclose(out, ref, atol=3e-2, rtol=3e-2), f"max abs err = {err}"

    print("KERNEL_OK")
</pallas_src>

<mosaic_0001>
module attributes {stable_mosaic.version = 11 : i64} {
  func.func @_stats_kernel(%arg0: i32, %arg1: memref<32x256xf32, #tpu.memory_space<vmem>>, %arg2: memref<1x2x256xf32, #tpu.memory_space<vmem>>) attributes {dimension_semantics = [#tpu.dimension_semantics<parallel>], iteration_bounds = array<i64: 2>, scalar_prefetch = 0 : i64, scratch_operands = 0 : i64, tpu.core_type = #tpu.core_type<tc>, window_params = [{transform_indices = @transform_0, window_bounds = array<i64: 32, 256>}, {transform_indices = @transform_1, window_bounds = array<i64: 1, 2, 256>}]} {
    %c0 = arith.constant 0 : index
    %c0_0 = arith.constant 0 : index
    %0 = vector.load %arg1[%c0, %c0_0] : memref<32x256xf32, #tpu.memory_space<vmem>>, vector<32x256xf32>
    %cst = arith.constant dense<0.000000e+00> : vector<256xf32>
    %1 = vector.multi_reduction <add>, %0, %cst [0] : vector<32x256xf32> to vector<256xf32>
    %2 = vector.shape_cast %1 : vector<256xf32> to vector<1x256xf32>
    %3 = arith.mulf %0, %0 : vector<32x256xf32>
    %cst_1 = arith.constant dense<0.000000e+00> : vector<256xf32>
    %4 = vector.multi_reduction <add>, %3, %cst_1 [0] : vector<32x256xf32> to vector<256xf32>
    %5 = vector.shape_cast %4 : vector<256xf32> to vector<1x256xf32>
    %6 = tpu.concatenate %2, %5 in 0 : vector<1x256xf32>, vector<1x256xf32> -> vector<2x256xf32>
    %c0_2 = arith.constant 0 : index
    %c0_3 = arith.constant 0 : index
    %c0_4 = arith.constant 0 : index
    %7 = vector.load %arg2[%c0_2, %c0_3, %c0_4] : memref<1x2x256xf32, #tpu.memory_space<vmem>>, vector<1x2x256xf32>
    %8 = vector.shape_cast %7 : vector<1x2x256xf32> to vector<2x256xf32>
    %9 = vector.shape_cast %6 : vector<2x256xf32> to vector<1x2x256xf32>
    tpu.vector_store %arg2[%c0_2, %c0_3, %c0_4], %9 {strides = array<i32>} : memref<1x2x256xf32, #tpu.memory_space<vmem>>, vector<1x2x256xf32>,
    return
  }
  func.func @transform_0(%arg0: i32) -> (i32, i32) {
    %c0_i32 = arith.constant 0 : i32
    %c0_i32_0 = arith.constant 0 : i32
    return %arg0, %c0_i32 : i32, i32
  }
  func.func @transform_1(%arg0: i32) -> (i32, i32, i32) {
    %c0_i32 = arith.constant 0 : i32
    %c0_i32_0 = arith.constant 0 : i32
    %c0_i32_1 = arith.constant 0 : i32
    return %arg0, %c0_i32, %c0_i32_0 : i32, i32, i32
  }
}

module attributes {stable_mosaic.version = 11 : i64} {
  func.func @_apply2_kernel(%arg0: i32, %arg1: memref<32x256xf32, #tpu.memory_space<vmem>>, %arg2: memref<32x256xf32, #tpu.memory_space<vmem>>, %arg3: memref<1x256xf32, #tpu.memory_space<vmem>>, %arg4: memref<1x256xf32, #tpu.memory_space<vmem>>, %arg5: memref<1x1xf32, #tpu.memory_space<vmem>>, %arg6: memref<3x256x256xbf16, #tpu.memory_space<vmem>>, %arg7: memref<32x256xf32, #tpu.memory_space<vmem>>) attributes {dimension_semantics = [#tpu.dimension_semantics<parallel>], iteration_bounds = array<i64: 2>, scalar_prefetch = 0 : i64, scratch_operands = 0 : i64, tpu.core_type = #tpu.core_type<tc>, window_params = [{transform_indices = @transform_0, window_bounds = array<i64: 32, 256>}, {transform_indices = @transform_1, window_bounds = array<i64: 32, 256>}, {pipeline_mode = #tpu.pipeline_mode<synchronous>, transform_indices = @transform_2, window_bounds = array<i64: 1, 256>}, {pipeline_mode = #tpu.pipeline_mode<synchronous>, transform_indices = @transform_3, window_bounds = array<i64: 1, 256>}, {pipeline_mode = #tpu.pipeline_mode<synchronous>, transform_indices = @transform_4, window_bounds = array<i64: 1, 1>}, {pipeline_mode = #tpu.pipeline_mode<synchronous>, transform_indices = @transform_5, window_bounds = array<i64: 3, 256, 256>}, {transform_indices = @transform_6, window_bounds = array<i64: 32, 256>}]} {
    %c0 = arith.constant 0 : index
    %c0_0 = arith.constant 0 : index
    %0 = vector.load %arg2[%c0, %c0_0] : memref<32x256xf32, #tpu.memory_space<vmem>>, vector<32x256xf32>
    %c0_1 = arith.constant 0 : index
    %c0_2 = arith.constant 0 : index
    %1 = vector.load %arg3[%c0_1, %c0_2] : memref<1x256xf32, #tpu.memory_space<vmem>>, vector<1x256xf32>
    %2 = vector.broadcast %1 : vector<1x256xf32> to vector<32x256xf32>
    %3 = arith.mulf %0, %2 : vector<32x256xf32>
    %c0_3 = arith.constant 0 : index
    %c0_4 = arith.constant 0 : index
    %4 = vector.load %arg4[%c0_3, %c0_4] : memref<1x256xf32, #tpu.memory_space<vmem>>, vector<1x256xf32>
    %5 = vector.broadcast %4 : vector<1x256xf32> to vector<32x256xf32>
    %6 = arith.addf %3, %5 : vector<32x256xf32>
    %c0_5 = arith.constant 0 : index
    %c0_6 = arith.constant 0 : index
    %7 = vector.load %arg5[%c0_5, %c0_6] : memref<1x1xf32, #tpu.memory_space<vmem>>, vector<1x1xf32>
    %8 = vector.extract %7[0, 0] : f32 from vector<1x1xf32>
    %cst = arith.constant 0.000000e+00 : f32
    %9 = vector.broadcast %cst : f32 to vector<32x256xf32>
    %10 = arith.cmpf oge, %6, %9 : vector<32x256xf32>
    %11 = vector.broadcast %8 : f32 to vector<32x256xf32>
    %12 = arith.mulf %11, %6 : vector<32x256xf32>
    %13 = arith.select %10, %6, %12 : vector<32x256xi1>, vector<32x256xf32>
    %14 = tpu.iota {dimensions = array<i32: 0>} : vector<32x256xi32>
    %c16_i32 = arith.constant 16 : i32
    %c0_i32 = arith.constant 0 : i32
    %15 = arith.cmpi eq, %c16_i32, %c0_i32 : i32
    %c1_i32 = arith.constant 1 : i32
    %16 = arith.select %15, %c1_i32, %c16_i32 : i32
    %17 = vector.broadcast %16 : i32 to vector<32x256xi32>
    %18 = arith.remsi %14, %17 : vector<32x256xi32>
    %c0_i32_7 = arith.constant 0 : i32
    %19 = vector.broadcast %c0_i32_7 : i32 to vector<32x256xi32>
    %20 = arith.cmpi ne, %18, %19 : vector<32x256xi32>
    %c0_i32_8 = arith.constant 0 : i32
    %21 = vector.broadcast %c0_i32_8 : i32 to vector<32x256xi32>
    %22 = arith.cmpi slt, %18, %21 : vector<32x256xi32>
    %c0_i32_9 = arith.constant 0 : i32
    %23 = arith.cmpi slt, %16, %c0_i32_9 : i32
    %24 = vector.broadcast %23 : i1 to vector<32x256xi1>
    %25 = vector.broadcast %24 : vector<32x256xi1> to vector<32x256xi1>
    %26 = arith.xori %22, %25 : vector<32x256xi1>
    %27 = arith.andi %26, %20 : vector<32x256xi1>
    %28 = vector.broadcast %16 : i32 to vector<32x256xi32>
    %29 = arith.addi %18, %28 : vector<32x256xi32>
    %30 = arith.select %27, %29, %18 : vector<32x256xi1>, vector<32x256xi32>
    %c0_i32_10 = arith.constant 0 : i32
    %31 = vector.broadcast %c0_i32_10 : i32 to vector<32x256xi32>
    %32 = arith.cmpi ne, %30, %31 : vector<32x256xi32>
    %c1_i32_11 = arith.constant 1 : i32
    %33 = tpu.dynamic_rotate %13 by %c1_i32_11 dim 0 : vector<32x256xf32>, i32 -> vector<32x256xf32>
    %cst_12 = arith.constant 0.000000e+00 : f32
    %34 = vector.broadcast %cst_12 : f32 to vector<32x256xf32>
    %35 = arith.select %32, %33, %34 : vector<32x256xi1>, vector<32x256xf32>
    %c16_i32_13 = arith.constant 16 : i32
    %c0_i32_14 = arith.constant 0 : i32
    %36 = arith.cmpi eq, %c16_i32_13, %c0_i32_14 : i32
    %c1_i32_15 = arith.constant 1 : i32
    %37 = arith.select %36, %c1_i32_15, %c16_i32_13 : i32
    %38 = vector.broadcast %37 : i32 to vector<32x256xi32>
    %39 = arith.remsi %14, %38 : vector<32x256xi32>
    %c0_i32_16 = arith.constant 0 : i32
    %40 = vector.broadcast %c0_i32_16 : i32 to vector<32x256xi32>
    %41 = arith.cmpi ne, %39, %40 : vector<32x256xi32>
    %c0_i32_17 = arith.constant 0 : i32
    %42 = vector.broadcast %c0_i32_17 : i32 to vector<32x256xi32>
    %43 = arith.cmpi slt, %39, %42 : vector<32x256xi32>
    %c0_i32_18 = arith.constant 0 : i32
    %44 = arith.cmpi slt, %37, %c0_i32_18 : i32
    %45 = vector.broadcast %44 : i1 to vector<32x256xi1>
    %46 = vector.broadcast %45 : vector<32x256xi1> to vector<32x256xi1>
    %47 = arith.xori %43, %46 : vector<32x256xi1>
    %48 = arith.andi %47, %41 : vector<32x256xi1>
    %49 = vector.broadcast %37 : i32 to vector<32x256xi32>
    %50 = arith.addi %39, %49 : vector<32x256xi32>
    %51 = arith.select %48, %50, %39 : vector<32x256xi1>, vector<32x256xi32>
    %c15_i32 = arith.constant 15 : i32
    %52 = vector.broadcast %c15_i32 : i32 to vector<32x256xi32>
    %53 = arith.cmpi ne, %51, %52 : vector<32x256xi32>
    %c31_i32 = arith.constant 31 : i32
    %54 = tpu.dynamic_rotate %13 by %c31_i32 dim 0 : vector<32x256xf32>, i32 -> vector<32x256xf32>
    %cst_19 = arith.constant 0.000000e+00 : f32
    %55 = vector.broadcast %cst_19 : f32 to vector<32x256xf32>
    %56 = arith.select %53, %54, %55 : vector<32x256xi1>, vector<32x256xf32>
    %57 = arith.truncf %35 : vector<32x256xf32> to vector<32x256xbf16>
    %c0_20 = arith.constant 0 : index
    %c0_21 = arith.constant 0 : index
    %c0_22 = arith.constant 0 : index
    %58 = vector.load %arg6[%c0_20, %c0_21, %c0_22] : memref<3x256x256xbf16, #tpu.memory_space<vmem>>, vector<1x256x256xbf16>
    %59 = vector.shape_cast %58 : vector<1x256x256xbf16> to vector<256x256xbf16>
    %cst_23 = arith.constant dense<0.000000e+00> : vector<32x256xf32>
    %60 = tpu.matmul %57, %59, %cst_23 {dimension_numbers = #tpu.dot_dimension_numbers<[1], [0], [0], [1], [0, 0, 1, 1], [], []>} : vector<32x256xbf16>, vector<256x256xbf16>, vector<32x256xf32> -> vector<32x256xf32>
    %61 = arith.truncf %13 : vector<32x256xf32> to vector<32x256xbf16>
    %c1 = arith.constant 1 : index
    %c0_24 = arith.constant 0 : index
    %c0_25 = arith.constant 0 : index
    %62 = vector.load %arg6[%c1, %c0_24, %c0_25] : memref<3x256x256xbf16, #tpu.memory_space<vmem>>, vector<1x256x256xbf16>
    %63 = vector.shape_cast %62 : vector<1x256x256xbf16> to vector<256x256xbf16>
    %cst_26 = arith.constant dense<0.000000e+00> : vector<32x256xf32>
    %64 = tpu.matmul %61, %63, %cst_26 {dimension_numbers = #tpu.dot_dimension_numbers<[1], [0], [0], [1], [0, 0, 1, 1], [], []>} : vector<32x256xbf16>, vector<256x256xbf16>, vector<32x256xf32> -> vector<32x256xf32>
    %65 = arith.addf %60, %64 : vector<32x256xf32>
    %66 = arith.truncf %56 : vector<32x256xf32> to vector<32x256xbf16>
    %c2 = arith.constant 2 : index
    %c0_27 = arith.constant 0 : index
    %c0_28 = arith.constant 0 : index
    %67 = vector.load %arg6[%c2, %c0_27, %c0_28] : memref<3x256x256xbf16, #tpu.memory_space<vmem>>, vector<1x256x256xbf16>
    %68 = vector.shape_cast %67 : vector<1x256x256xbf16> to vector<256x256xbf16>
    %cst_29 = arith.constant dense<0.000000e+00> : vector<32x256xf32>
    %69 = tpu.matmul %66, %68, %cst_29 {dimension_numbers = #tpu.dot_dimension_numbers<[1], [0], [0], [1], [0, 0, 1, 1], [], []>} : vector<32x256xbf16>, vector<256x256xbf16>, vector<32x256xf32> -> vector<32x256xf32>
    %70 = arith.addf %65, %69 : vector<32x256xf32>
    %c0_30 = arith.constant 0 : index
    %c0_31 = arith.constant 0 : index
    %71 = vector.load %arg1[%c0_30, %c0_31] : memref<32x256xf32, #tpu.memory_space<vmem>>, vector<32x256xf32>
    %72 = arith.addf %70, %71 : vector<32x256xf32>
    %c0_32 = arith.constant 0 : index
    %c0_33 = arith.constant 0 : index
    %73 = vector.load %arg7[%c0_32, %c0_33] : memref<32x256xf32, #tpu.memory_space<vmem>>, vector<32x256xf32>
    tpu.vector_store %arg7[%c0_32, %c0_33], %72 {strides = array<i32>} : memref<32x256xf32, #tpu.memory_space<vmem>>, vector<32x256xf32>,
    return
  }
  func.func @transform_0(%arg0: i32) -> (i32, i32) {
    %c0_i32 = arith.constant 0 : i32
    %c0_i32_0 = arith.constant 0 : i32
    return %arg0, %c0_i32 : i32, i32
  }
  func.func @transform_1(%arg0: i32) -> (i32, i32) {
    %c0_i32 = arith.constant 0 : i32
    %c0_i32_0 = arith.constant 0 : i32
    return %arg0, %c0_i32 : i32, i32
  }
  func.func @transform_2(%arg0: i32) -> (i32, i32) {
    %c0_i32 = arith.constant 0 : i32
    %c0_i32_0 = arith.constant 0 : i32
    %c0_i32_1 = arith.constant 0 : i32
    return %c0_i32, %c0_i32_0 : i32, i32
  }
  func.func @transform_3(%arg0: i32) -> (i32, i32) {
    %c0_i32 = arith.constant 0 : i32
    %c0_i32_0 = arith.constant 0 : i32
    %c0_i32_1 = arith.constant 0 : i32
    return %c0_i32, %c0_i32_0 : i32, i32
  }
  func.func @transform_4(%arg0: i32) -> (i32, i32) {
    %c0_i32 = arith.constant 0 : i32
    %c0_i32_0 = arith.constant 0 : i32
    %c0_i32_1 = arith.constant 0 : i32
    return %c0_i32, %c0_i32_0 : i32, i32
  }
  func.func @transform_5(%arg0: i32) -> (i32, i32, i32) {
    %c0_i32 = arith.constant 0 : i32
    %c0_i32_0 = arith.constant 0 : i32
    %c0_i32_1 = arith.constant 0 : i32
    %c0_i32_2 = arith.constant 0 : i32
    return %c0_i32, %c0_i32_0, %c0_i32_1 : i32, i32, i32
  }
  func.func @transform_6(%arg0: i32) -> (i32, i32) {
    %c0_i32 = arith.constant 0 : i32
    %c0_i32_0 = arith.constant 0 : i32
    return %arg0, %c0_i32 : i32, i32
  }
}

module attributes {stable_mosaic.version = 11 : i64} {
  func.func @_apply1_kernel(%arg0: i32, %arg1: memref<32x256xf32, #tpu.memory_space<vmem>>, %arg2: memref<1x256xf32, #tpu.memory_space<vmem>>, %arg3: memref<1x256xf32, #tpu.memory_space<vmem>>, %arg4: memref<1x1xf32, #tpu.memory_space<vmem>>, %arg5: memref<3x256x256xbf16, #tpu.memory_space<vmem>>, %arg6: memref<32x256xf32, #tpu.memory_space<vmem>>, %arg7: memref<1x2x256xf32, #tpu.memory_space<vmem>>) attributes {dimension_semantics = [#tpu.dimension_semantics<parallel>], iteration_bounds = array<i64: 2>, scalar_prefetch = 0 : i64, scratch_operands = 0 : i64, tpu.core_type = #tpu.core_type<tc>, window_params = [{transform_indices = @transform_0, window_bounds = array<i64: 32, 256>}, {pipeline_mode = #tpu.pipeline_mode<synchronous>, transform_indices = @transform_1, window_bounds = array<i64: 1, 256>}, {pipeline_mode = #tpu.pipeline_mode<synchronous>, transform_indices = @transform_2, window_bounds = array<i64: 1, 256>}, {pipeline_mode = #tpu.pipeline_mode<synchronous>, transform_indices = @transform_3, window_bounds = array<i64: 1, 1>}, {pipeline_mode = #tpu.pipeline_mode<synchronous>, transform_indices = @transform_4, window_bounds = array<i64: 3, 256, 256>}, {transform_indices = @transform_5, window_bounds = array<i64: 32, 256>}, {transform_indices = @transform_6, window_bounds = array<i64: 1, 2, 256>}]} {
    %c0 = arith.constant 0 : index
    %c0_0 = arith.constant 0 : index
    %0 = vector.load %arg1[%c0, %c0_0] : memref<32x256xf32, #tpu.memory_space<vmem>>, vector<32x256xf32>
    %c0_1 = arith.constant 0 : index
    %c0_2 = arith.constant 0 : index
    %1 = vector.load %arg2[%c0_1, %c0_2] : memref<1x256xf32, #tpu.memory_space<vmem>>, vector<1x256xf32>
    %2 = vector.broadcast %1 : vector<1x256xf32> to vector<32x256xf32>
    %3 = arith.mulf %0, %2 : vector<32x256xf32>
    %c0_3 = arith.constant 0 : index
    %c0_4 = arith.constant 0 : index
    %4 = vector.load %arg3[%c0_3, %c0_4] : memref<1x256xf32, #tpu.memory_space<vmem>>, vector<1x256xf32>
    %5 = vector.broadcast %4 : vector<1x256xf32> to vector<32x256xf32>
    %6 = arith.addf %3, %5 : vector<32x256xf32>
    %c0_5 = arith.constant 0 : index
    %c0_6 = arith.constant 0 : index
    %7 = vector.load %arg4[%c0_5, %c0_6] : memref<1x1xf32, #tpu.memory_space<vmem>>, vector<1x1xf32>
    %8 = vector.extract %7[0, 0] : f32 from vector<1x1xf32>
    %cst = arith.constant 0.000000e+00 : f32
    %9 = vector.broadcast %cst : f32 to vector<32x256xf32>
    %10 = arith.cmpf oge, %6, %9 : vector<32x256xf32>
    %11 = vector.broadcast %8 : f32 to vector<32x256xf32>
    %12 = arith.mulf %11, %6 : vector<32x256xf32>
    %13 = arith.select %10, %6, %12 : vector<32x256xi1>, vector<32x256xf32>
    %14 = tpu.iota {dimensions = array<i32: 0>} : vector<32x256xi32>
    %c16_i32 = arith.constant 16 : i32
    %c0_i32 = arith.constant 0 : i32
    %15 = arith.cmpi eq, %c16_i32, %c0_i32 : i32
    %c1_i32 = arith.constant 1 : i32
    %16 = arith.select %15, %c1_i32, %c16_i32 : i32
    %17 = vector.broadcast %16 : i32 to vector<32x256xi32>
    %18 = arith.remsi %14, %17 : vector<32x256xi32>
    %c0_i32_7 = arith.constant 0 : i32
    %19 = vector.broadcast %c0_i32_7 : i32 to vector<32x256xi32>
    %20 = arith.cmpi ne, %18, %19 : vector<32x256xi32>
    %c0_i32_8 = arith.constant 0 : i32
    %21 = vector.broadcast %c0_i32_8 : i32 to vector<32x256xi32>
    %22 = arith.cmpi slt, %18, %21 : vector<32x256xi32>
    %c0_i32_9 = arith.constant 0 : i32
    %23 = arith.cmpi slt, %16, %c0_i32_9 : i32
    %24 = vector.broadcast %23 : i1 to vector<32x256xi1>
    %25 = vector.broadcast %24 : vector<32x256xi1> to vector<32x256xi1>
    %26 = arith.xori %22, %25 : vector<32x256xi1>
    %27 = arith.andi %26, %20 : vector<32x256xi1>
    %28 = vector.broadcast %16 : i32 to vector<32x256xi32>
    %29 = arith.addi %18, %28 : vector<32x256xi32>
    %30 = arith.select %27, %29, %18 : vector<32x256xi1>, vector<32x256xi32>
    %c0_i32_10 = arith.constant 0 : i32
    %31 = vector.broadcast %c0_i32_10 : i32 to vector<32x256xi32>
    %32 = arith.cmpi ne, %30, %31 : vector<32x256xi32>
    %c1_i32_11 = arith.constant 1 : i32
    %33 = tpu.dynamic_rotate %13 by %c1_i32_11 dim 0 : vector<32x256xf32>, i32 -> vector<32x256xf32>
    %cst_12 = arith.constant 0.000000e+00 : f32
    %34 = vector.broadcast %cst_12 : f32 to vector<32x256xf32>
    %35 = arith.select %32, %33, %34 : vector<32x256xi1>, vector<32x256xf32>
    %c16_i32_13 = arith.constant 16 : i32
    %c0_i32_14 = arith.constant 0 : i32
    %36 = arith.cmpi eq, %c16_i32_13, %c0_i32_14 : i32
    %c1_i32_15 = arith.constant 1 : i32
    %37 = arith.select %36, %c1_i32_15, %c16_i32_13 : i32
    %38 = vector.broadcast %37 : i32 to vector<32x256xi32>
    %39 = arith.remsi %14, %38 : vector<32x256xi32>
    %c0_i32_16 = arith.constant 0 : i32
    %40 = vector.broadcast %c0_i32_16 : i32 to vector<32x256xi32>
    %41 = arith.cmpi ne, %39, %40 : vector<32x256xi32>
    %c0_i32_17 = arith.constant 0 : i32
    %42 = vector.broadcast %c0_i32_17 : i32 to vector<32x256xi32>
    %43 = arith.cmpi slt, %39, %42 : vector<32x256xi32>
    %c0_i32_18 = arith.constant 0 : i32
    %44 = arith.cmpi slt, %37, %c0_i32_18 : i32
    %45 = vector.broadcast %44 : i1 to vector<32x256xi1>
    %46 = vector.broadcast %45 : vector<32x256xi1> to vector<32x256xi1>
    %47 = arith.xori %43, %46 : vector<32x256xi1>
    %48 = arith.andi %47, %41 : vector<32x256xi1>
    %49 = vector.broadcast %37 : i32 to vector<32x256xi32>
    %50 = arith.addi %39, %49 : vector<32x256xi32>
    %51 = arith.select %48, %50, %39 : vector<32x256xi1>, vector<32x256xi32>
    %c15_i32 = arith.constant 15 : i32
    %52 = vector.broadcast %c15_i32 : i32 to vector<32x256xi32>
    %53 = arith.cmpi ne, %51, %52 : vector<32x256xi32>
    %c31_i32 = arith.constant 31 : i32
    %54 = tpu.dynamic_rotate %13 by %c31_i32 dim 0 : vector<32x256xf32>, i32 -> vector<32x256xf32>
    %cst_19 = arith.constant 0.000000e+00 : f32
    %55 = vector.broadcast %cst_19 : f32 to vector<32x256xf32>
    %56 = arith.select %53, %54, %55 : vector<32x256xi1>, vector<32x256xf32>
    %57 = arith.truncf %35 : vector<32x256xf32> to vector<32x256xbf16>
    %c0_20 = arith.constant 0 : index
    %c0_21 = arith.constant 0 : index
    %c0_22 = arith.constant 0 : index
    %58 = vector.load %arg5[%c0_20, %c0_21, %c0_22] : memref<3x256x256xbf16, #tpu.memory_space<vmem>>, vector<1x256x256xbf16>
    %59 = vector.shape_cast %58 : vector<1x256x256xbf16> to vector<256x256xbf16>
    %cst_23 = arith.constant dense<0.000000e+00> : vector<32x256xf32>
    %60 = tpu.matmul %57, %59, %cst_23 {dimension_numbers = #tpu.dot_dimension_numbers<[1], [0], [0], [1], [0, 0, 1, 1], [], []>} : vector<32x256xbf16>, vector<256x256xbf16>, vector<32x256xf32> -> vector<32x256xf32>
    %61 = arith.truncf %13 : vector<32x256xf32> to vector<32x256xbf16>
    %c1 = arith.constant 1 : index
    %c0_24 = arith.constant 0 : index
    %c0_25 = arith.constant 0 : index
    %62 = vector.load %arg5[%c1, %c0_24, %c0_25] : memref<3x256x256xbf16, #tpu.memory_space<vmem>>, vector<1x256x256xbf16>
    %63 = vector.shape_cast %62 : vector<1x256x256xbf16> to vector<256x256xbf16>
    %cst_26 = arith.constant dense<0.000000e+00> : vector<32x256xf32>
    %64 = tpu.matmul %61, %63, %cst_26 {dimension_numbers = #tpu.dot_dimension_numbers<[1], [0], [0], [1], [0, 0, 1, 1], [], []>} : vector<32x256xbf16>, vector<256x256xbf16>, vector<32x256xf32> -> vector<32x256xf32>
    %65 = arith.addf %60, %64 : vector<32x256xf32>
    %66 = arith.truncf %56 : vector<32x256xf32> to vector<32x256xbf16>
    %c2 = arith.constant 2 : index
    %c0_27 = arith.constant 0 : index
    %c0_28 = arith.constant 0 : index
    %67 = vector.load %arg5[%c2, %c0_27, %c0_28] : memref<3x256x256xbf16, #tpu.memory_space<vmem>>, vector<1x256x256xbf16>
    %68 = vector.shape_cast %67 : vector<1x256x256xbf16> to vector<256x256xbf16>
    %cst_29 = arith.constant dense<0.000000e+00> : vector<32x256xf32>
    %69 = tpu.matmul %66, %68, %cst_29 {dimension_numbers = #tpu.dot_dimension_numbers<[1], [0], [0], [1], [0, 0, 1, 1], [], []>} : vector<32x256xbf16>, vector<256x256xbf16>, vector<32x256xf32> -> vector<32x256xf32>
    %70 = arith.addf %65, %69 : vector<32x256xf32>
    %c0_30 = arith.constant 0 : index
    %c0_31 = arith.constant 0 : index
    %71 = vector.load %arg6[%c0_30, %c0_31] : memref<32x256xf32, #tpu.memory_space<vmem>>, vector<32x256xf32>
    tpu.vector_store %arg6[%c0_30, %c0_31], %70 {strides = array<i32>} : memref<32x256xf32, #tpu.memory_space<vmem>>, vector<32x256xf32>,
    %cst_32 = arith.constant dense<0.000000e+00> : vector<256xf32>
    %72 = vector.multi_reduction <add>, %70, %cst_32 [0] : vector<32x256xf32> to vector<256xf32>
    %73 = vector.shape_cast %72 : vector<256xf32> to vector<1x256xf32>
    %74 = arith.mulf %70, %70 : vector<32x256xf32>
    %cst_33 = arith.constant dense<0.000000e+00> : vector<256xf32>
    %75 = vector.multi_reduction <add>, %74, %cst_33 [0] : vector<32x256xf32> to vector<256xf32>
    %76 = vector.shape_cast %75 : vector<256xf32> to vector<1x256xf32>
    %77 = tpu.concatenate %73, %76 in 0 : vector<1x256xf32>, vector<1x256xf32> -> vector<2x256xf32>
    %c0_34 = arith.constant 0 : index
    %c0_35 = arith.constant 0 : index
    %c0_36 = arith.constant 0 : index
    %78 = vector.load %arg7[%c0_34, %c0_35, %c0_36] : memref<1x2x256xf32, #tpu.memory_space<vmem>>, vector<1x2x256xf32>
    %79 = vector.shape_cast %78 : vector<1x2x256xf32> to vector<2x256xf32>
    %80 = vector.shape_cast %77 : vector<2x256xf32> to vector<1x2x256xf32>
    tpu.vector_store %arg7[%c0_34, %c0_35, %c0_36], %80 {strides = array<i32>} : memref<1x2x256xf32, #tpu.memory_space<vmem>>, vector<1x2x256xf32>,
    return
  }
  func.func @transform_0(%arg0: i32) -> (i32, i32) {
    %c0_i32 = arith.constant 0 : i32
    %c0_i32_0 = arith.constant 0 : i32
    return %arg0, %c0_i32 : i32, i32
  }
  func.func @transform_1(%arg0: i32) -> (i32, i32) {
    %c0_i32 = arith.constant 0 : i32
    %c0_i32_0 = arith.constant 0 : i32
    %c0_i32_1 = arith.constant 0 : i32
    return %c0_i32, %c0_i32_0 : i32, i32
  }
  func.func @transform_2(%arg0: i32) -> (i32, i32) {
    %c0_i32 = arith.constant 0 : i32
    %c0_i32_0 = arith.constant 0 : i32
    %c0_i32_1 = arith.constant 0 : i32
    return %c0_i32, %c0_i32_0 : i32, i32
  }
  func.func @transform_3(%arg0: i32) -> (i32, i32) {
    %c0_i32 = arith.constant 0 : i32
    %c0_i32_0 = arith.constant 0 : i32
    %c0_i32_1 = arith.constant 0 : i32
    return %c0_i32, %c0_i32_0 : i32, i32
  }
  func.func @transform_4(%arg0: i32) -> (i32, i32, i32) {
    %c0_i32 = arith.constant 0 : i32
    %c0_i32_0 = arith.constant 0 : i32
    %c0_i32_1 = arith.constant 0 : i32
    %c0_i32_2 = arith.constant 0 : i32
    return %c0_i32, %c0_i32_0, %c0_i32_1 : i32, i32, i32
  }
  func.func @transform_5(%arg0: i32) -> (i32, i32) {
    %c0_i32 = arith.constant 0 : i32
    %c0_i32_0 = arith.constant 0 : i32
    return %arg0, %c0_i32 : i32, i32
  }
  func.func @transform_6(%arg0: i32) -> (i32, i32, i32) {
    %c0_i32 = arith.constant 0 : i32
    %c0_i32_0 = arith.constant 0 : i32
    %c0_i32_1 = arith.constant 0 : i32
    return %arg0, %c0_i32, %c0_i32_0 : i32, i32, i32
  }
}

</mosaic_0001>

<bundles_post_ra>
// kernel: tile.28
= control target key start
LH: loop header
LB: loop body
LE: loop exit
PB: predicated region body
PF: predicated region fallthrough
CT: control target
= control target key end

     0   :  { %s28_s0 = inlined_call_operand.vmem [shape: f32[16], index: 0, kind: input, shape index: {}]   ;;  %s29_s1 = inlined_call_operand.vmem [shape: f32[16,16], index: 1, kind: output, shape index: {}]  }
   0x1   :  { %v4_v0 = vld [vmem:[%s28_s0] ss:$0 sm:$0xff] }
   0x2   :  { %5 = vst [vmem:[%s29_s1] sm:$0xff] %v4_v0  ;;  %8 = vst [vmem:[%s29_s1 + $0x8] sm:$0xff] %v4_v0 }

// kernel: tile.29
= control target key start
LH: loop header
LB: loop body
LE: loop exit
PB: predicated region body
PF: predicated region fallthrough
CT: control target
= control target key end

     0   :  { %s7_s6 = smov 3  ;;  %s21_s9 = smov 3  ;;  %vm4_vm0 = vcmask 130048   ;;  %vm11_vm1 = vcmask 1048448   ;;  %vm18_vm2 = vcmask 917248   ;;  %vm25_vm3 = vcmask 786048   ;;  %s131_s0 = inlined_call_operand.vmem [shape: f32[16,16], index: 0, kind: input, shape index: {}]   ;;  %s132_s1 = inlined_call_operand.vmem [shape: f32[1,256], index: 1, kind: output, shape index: {}]  }
   0x1   :  { %v69_v0 = vld [vmem:[%s131_s0 + $0x7] ss:$8 sm:%s7_s6]   ;;  %s84_s10 = smov 112   ;;  %v71_v1 = vld [vmem:[%s131_s0 + $0x5] ss:$8 sm:%s21_s9]   ;;  %s14_s13 = smov 3 }
   0x2   :  { %9 = vrot.lane.b32.xlu0 %v69_v0, %s84_s10  ;;  %s85_s14 = smov 80   ;;  %v70_v2 = vld [vmem:[%s131_s0 + $0x6] ss:$8 sm:%s14_s13]   ;;  %s28_s17 = smov 3  ;;  %vm32_vm4 = vcmask 654848   ;;  %vm39_vm5 = vcmask 523648  }
   0x3   :  { %23 = vrot.lane.b32.xlu1 %v71_v1, %s85_s14  ;;  %v72_v3 = vld [vmem:[%s131_s0 + $0x4] ss:$8 sm:%s28_s17]   ;;  %s35_s20 = smov 3  ;;  %s42_s21 = smov 3  ;;  %vm46_vm6 = vcmask 392448   ;;  %vm53_vm7 = vcmask 261248  }
   0x4   :  { %s86_s22 = smov 96   ;;  %s87_s23 = smov 64   ;;  %v73_v4 = vld [vmem:[%s131_s0 + $0x3] ss:$8 sm:%s35_s20]   ;;  %v74_v5 = vld [vmem:[%s131_s0 + $0x2] ss:$8 sm:%s42_s21]  }
   0x5   :  { %s2_s26 = smov 3  ;;  %s49_s29 = smov 3 }
   0x6   :  { %16 = vrot.lane.b32.xlu0 %v70_v2, %s86_s22  ;;  %v3_v6 = vld [vmem:[%s131_s0] ss:$8 sm:%s2_s26]   ;;  %s88_s3 = smov 48   ;;  %s89_s4 = smov 32  }
   0x7   :  { %30 = vrot.lane.b32.xlu1 %v72_v3, %s87_s23  ;;  %5 = vst.msk [vmem:[#allocation0] ss:$8 sm:$0x3] %vm4_vm0, %v3_v6   ;;  %v75_v7 = vld [vmem:[%s131_s0 + $0x1] ss:$8 sm:%s49_s29]   ;;  %s90_s0 = smov 16  }
   0xa   :  { %37 = vrot.lane.b32.xlu0 %v73_v4, %s88_s3 }
   0xb   :  { %44 = vrot.lane.b32.xlu1 %v74_v5, %s89_s4 }
   0xe   :  { %51 = vrot.lane.b32.xlu0 %v75_v7, %s90_s0 }
  0x74   :  { %v10_v8 = vpop.permute.xlu0 %9  }
  0x75   :  { %12 = vst.msk [vmem:[#allocation0] ss:$8 sm:$0x3] %vm11_vm1, %v10_v8   ;;  %v24_v9 = vpop.permute.xlu1 %23  }
  0x78   :  { %v17_v10 = vpop.permute.xlu0 %16  }
  0x79   :  { %19 = vst.msk [vmem:[#allocation0] ss:$8 sm:$0x3] %vm18_vm2, %v17_v10   ;;  %v31_v11 = vpop.permute.xlu1 %30  }
  0x7a   :  { %26 = vst.msk [vmem:[#allocation0] ss:$8 sm:$0x3] %vm25_vm3, %v24_v9  }
  0x7b   :  { %33 = vst.msk [vmem:[#allocation0] ss:$8 sm:$0x3] %vm32_vm4, %v31_v11  }
  0x7c   :  { %v38_v12 = vpop.permute.xlu0 %37  }
  0x7d   :  { %40 = vst.msk [vmem:[#allocation0] ss:$8 sm:$0x3] %vm39_vm5, %v38_v12   ;;  %v45_v13 = vpop.permute.xlu1 %44  }
  0x7e   :  { %47 = vst.msk [vmem:[#allocation0] ss:$8 sm:$0x3] %vm46_vm6, %v45_v13  }
  0x80   :  { %v52_v14 = vpop.permute.xlu0 %51  }
  0x81   :  { %54 = vst.msk [vmem:[#allocation0] ss:$8 sm:$0x3] %vm53_vm7, %v52_v14  }
  0x88   :  { %v59_v15 = vld [vmem:[#allocation0] sm:$0x1]  ;;  %v64_v16 = vld [vmem:[#allocation0 + $0x8] sm:$0x1] }
  0x89   :  { %62 = vst [vmem:[%s132_s1] sm:$0x1] %v59_v15  ;;  %76 = vst [vmem:[%s132_s1 + $0x1] sm:$0x1] %v64_v16 }

// kernel: resblock_forward_nhwc.3
= control target key start
LH: loop header
LB: loop body
LE: loop exit
PB: predicated region body
PF: predicated region fallthrough
CT: control target
= control target key end

     0   :  { %s285_s6 = smov 0   ;;  %s307_s0 = inlined_call_operand.vmem [shape: f32[64,256], index: 0, kind: input, shape index: {}]   ;;  %s308_s1 = inlined_call_operand.vmem [shape: f32[2,2,256], index: 1, kind: output, shape index: {}]  }
   0x1 LB: > { %s291_s7 = sadd.s32 4294967295, %s273_s6   ;;  %p248_p0 = scmp.ge.s32.totalorder %s273_s6, 1  ;;  %s273_s6 = sphi %s285_s6, %s11_s6  }
   0x2   : > { %p89_p1 = scmp.lt.s32.totalorder %s273_s6, 3 }
   0x4   : > { %p90_p2 = pnand %p248_p0, %p89_p1 }
   0x5   : > { %s249_s8 = sshll.u32 (!%p90_p2), %s291_s7, 2  ;;  %p117_p4 = scmp.lt.s32.totalorder (!%p90_p2), %s291_s7, 1 }
   0x6   : > { %93 = sbr.rel (%p90_p2) target bundleno = 40 (0x28), region = 24  ;;  %p111_p3 = scmp.lt.s32.totalorder (!%p90_p2), %s249_s8, 7 }
   0xb   : > { %s310_s8 = smov (!%p111_p3, %s249_s8), 7  ;;  %s312_s7 = smov (!%p117_p4, %s291_s7), 1  ;;  %vm174_vm0 = vcmask 1040384  }
   0xc   : > { %s257_s9 = sshll.u32 %s310_s8, 4  ;;  %s258_s13 = sshll.u32 %s312_s7, 2 }
   0xd   : > { %s115_s12 = scalar_lea.vmem %s307_s0, %s257_s9  ;;  %s121_s16 = scalar_lea.vmem %s308_s1, %s258_s13 }
   0xe   : > { %v122_v0 = vld [vmem:[%s115_s12] sm:$0xff]  ;;  %v123_v1 = vld [vmem:[%s115_s12 + $0x8] sm:$0xff]  ;;  %v124_v2 = vld [vmem:[%s115_s12 + $0x10] sm:$0xff] }
   0xf   : > { %v125_v3 = vld [vmem:[%s115_s12 + $0x18] sm:$0xff]  ;;  %v126_v4 = vld [vmem:[%s115_s12 + $0x20] sm:$0xff]  ;;  %v127_v5 = vld [vmem:[%s115_s12 + $0x28] sm:$0xff]  ;;  %v130_v6 = vadd.f32 %v124_v2, %v122_v0  ;;  %v148_v7 = vmul.f32 %v122_v0, %v122_v0  ;;  %v149_v8 = vmul.f32 %v123_v1, %v123_v1  ;;  %v150_v9 = vmul.f32 %v124_v2, %v124_v2 }
  0x10   : > { %v128_v10 = vld [vmem:[%s115_s12 + $0x30] sm:$0xff]  ;;  %v129_v11 = vld [vmem:[%s115_s12 + $0x38] sm:$0xff]  ;;  %v139_v12 = vadd.f32 %v125_v3, %v123_v1  ;;  %v151_v13 = vmul.f32 %v125_v3, %v125_v3  ;;  %v152_v14 = vmul.f32 %v126_v4, %v126_v4  ;;  %v153_v15 = vmul.f32 %v127_v5, %v127_v5 }
  0x11   : > { %v131_v16 = vadd.f32 %v130_v6, %v126_v4  ;;  %v154_v17 = vmul.f32 %v128_v10, %v128_v10  ;;  %v156_v18 = vadd.f32 %v150_v9, %v148_v7  ;;  %v155_v20 = vmul.f32 %v129_v11, %v129_v11 }
  0x12   : > { %v140_v19 = vadd.f32 %v139_v12, %v127_v5  ;;  %v165_v21 = vadd.f32 %v151_v13, %v149_v8 }
  0x13   : > { %v132_v22 = vadd.f32 %v131_v16, %v128_v10  ;;  %v157_v23 = vadd.f32 %v156_v18, %v152_v14 }
  0x14   : > { %v141_v24 = vadd.f32 %v140_v19, %v129_v11  ;;  %v166_v25 = vadd.f32 %v165_v21, %v153_v15 }
  0x15   : > { %v133_v26 = vrot.slane %v132_v22, 4  ;;  %v158_v27 = vadd.f32 %v157_v23, %v154_v17 }
  0x16   : > { %v142_v28 = vrot.slane %v141_v24, 4  ;;  %v167_v29 = vadd.f32 %v166_v25, %v155_v20 }
  0x17   : > { %v134_v30 = vadd.f32 %v133_v26, %v132_v22  ;;  %v159_v31 = vrot.slane %v158_v27, 4 }
  0x18   : > { %v143_v32 = vadd.f32 %v142_v28, %v141_v24  ;;  %v168_v33 = vrot.slane %v167_v29, 4 }
  0x19   : > { %v135_v34 = vrot.slane %v134_v30, 2  ;;  %v160_v35 = vadd.f32 %v159_v31, %v158_v27 }
  0x1a   : > { %v144_v36 = vrot.slane %v143_v32, 2  ;;  %v169_v37 = vadd.f32 %v168_v33, %v167_v29 }
  0x1b   : > { %v136_v38 = vadd.f32 %v135_v34, %v134_v30  ;;  %v161_v39 = vrot.slane %v160_v35, 2 }
  0x1c   : > { %v145_v40 = vadd.f32 %v144_v36, %v143_v32  ;;  %v170_v41 = vrot.slane %v169_v37, 2 }
  0x1d   : > { %v137_v42 = vrot.slane %v136_v38, 1  ;;  %v162_v43 = vadd.f32 %v161_v39, %v160_v35 }
  0x1e   : > { %v146_v44 = vrot.slane %v145_v40, 1  ;;  %v171_v45 = vadd.f32 %v170_v41, %v169_v37 }
  0x1f   : > { %v138_v46 = vadd.f32 %v137_v42, %v136_v38  ;;  %v163_v47 = vrot.slane %v162_v43, 1 }
  0x20   : > { %v147_v48 = vadd.f32 %v146_v44, %v145_v40  ;;  %v172_v49 = vrot.slane %v171_v45, 1 }
  0x21   : > { %v164_v50 = vadd.f32 %v163_v47, %v162_v43 }
  0x22   : > { %v173_v51 = vadd.f32 %v172_v49, %v171_v45 }
  0x23   : > { %v175_v52 = vsel %vm174_vm0, %v138_v46, %v164_v50 }
  0x24   : > { %v176_v53 = vsel %vm174_vm0, %v147_v48, %v173_v51 }
  0x25   : > { %v179_v54 = vcombine.low %v175_v52, %v176_v53 }
  0x27   : > { %254 = vst.sshfl [vmem:[%s121_s16] sm:$0x33 pattern:$0x76325410] %v179_v54 }
  0x28 PF: > { %s11_s6 = sadd.s32 1, %s273_s6  }
  0x29   : > { %p8_p5 = scmp.ge.s32.totalorder %s11_s6, 4  }
  0x2b   :  { %10 = sbr.rel (!%p8_p5) target bundleno = 1 (0x1), region = 54 }

// kernel: resblock_forward_nhwc.5
= control target key start
LH: loop header
LB: loop body
LE: loop exit
PB: predicated region body
PF: predicated region fallthrough
CT: control target
= control target key end

     0   :  { %s1761_s23 = smov 0   ;;  %s2263_s0 = inlined_call_operand.vmem [shape: f32[64,256], index: 0, kind: input, shape index: {}]   ;;  %s2264_s1 = inlined_call_operand.vmem [shape: f32[64,256], index: 1, kind: input, shape index: {}]   ;;  %s2265_s2 = inlined_call_operand.vmem [shape: f32[1,256], index: 2, kind: input, shape index: {}]   ;;  %s2266_s3 = inlined_call_operand.vmem [shape: f32[1,256], index: 3, kind: input, shape index: {}]   ;;  %s2267_s4 = inlined_call_operand.<no memory space> [shape: f32[1,1], index: 4, kind: input, shape index: {}]   ;;  %s2268_s5 = inlined_call_operand.vmem [shape: bf16[3,256,256], index: 5, kind: input, shape index: {}]   ;;  %s2269_s6 = inlined_call_operand.vmem [shape: f32[64,256], index: 6, kind: output, shape index: {}]  }
   0x1   :  { %v11_v0 = vstv %s2267_s4 }
   0x2   :  { %12 = vst [vmem:[#allocation2] sm:$0x1] %v11_v0 }
   0x3 LB: > { %s1324_s24 = sadd.s32 4294967295, %s1720_s23   ;;  %p1328_p0 = scmp.ge.s32.totalorder %s1720_s23, 1  ;;  %s1720_s23 = sphi %s1761_s23, %s18_s23  }
   0x4   : > { %p228_p1 = scmp.lt.s32.totalorder %s1720_s23, 3 }
   0x6   : > { %p229_p2 = pnand %p1328_p0, %p228_p1 }
   0x7   : > { %s1329_s14 = sshll.u32 (!%p229_p2), %s1324_s24, 2 }
   0x8   : > { %232 = sbr.rel (%p229_p2) target bundleno = 347 (0x15b), region = 44  ;;  %p267_p3 = scmp.lt.s32.totalorder (!%p229_p2), %s1329_s14, 7 }
   0xd   : > { %v1570_v1 = vld [vmem:[%s2268_s5 + $0x174] ss:$8 sps:$4 sm:$0xff]   ;;  %v1574_v3 = vld [vmem:[%s2268_s5 + $0x170] ss:$8 sps:$4 sm:$0xff]   ;;  %v335_v5 = vld [vmem:[#allocation2] sm:$0x1]  ;;  %v297_v36 = vlaneseq }
   0xe   : > { %v1572_v2 = vld [vmem:[%s2268_s5 + $0x74] ss:$8 sps:$4 sm:$0xff]   ;;  %706 = vmatprep.subr.bf16.mxu0 %v1570_v1  ;;  %v1575_v4 = vld [vmem:[%s2268_s5 + $0x70] ss:$8 sps:$4 sm:$0xff]   ;;  %1559 = vpush %v335_v5  ;;  %v1576_v6 = vld [vmem:[%s2268_s5 + $0x164] ss:$8 sps:$4 sm:$0xff]  }
   0xf   : > { %919 = vmatprep.subr.bf16.mxu1 %v1572_v2  ;;  %707 = vmatpush1.bf16.msra.mxu0 %v1574_v3  ;;  %v1578_v7 = vld [vmem:[%s2268_s5 + $0x64] ss:$8 sps:$4 sm:$0xff]   ;;  %v1580_v8 = vld [vmem:[%s2268_s5 + $0x160] ss:$8 sps:$4 sm:$0xff]   ;;  %v1582_v10 = vld [vmem:[%s2268_s5 + $0x154] ss:$8 sps:$4 sm:$0xff]  }
  0x10   : > { %920 = vmatpush1.bf16.msra.mxu1 %v1575_v4  ;;  %708 = vmatprep.subr.bf16.mxu0 %v1576_v6  ;;  %v1581_v9 = vld [vmem:[%s2268_s5 + $0x60] ss:$8 sps:$4 sm:$0xff]   ;;  %v1584_v11 = vld [vmem:[%s2268_s5 + $0x54] ss:$8 sps:$4 sm:$0xff]   ;;  %v1586_v12 = vld [vmem:[%s2268_s5 + $0x150] ss:$8 sps:$4 sm:$0xff]  }
  0x11   : > { %921 = vmatprep.subr.bf16.mxu1 %v1578_v7  ;;  %v1587_v13 = vld [vmem:[%s2268_s5 + $0x50] ss:$8 sps:$4 sm:$0xff]   ;;  %v1588_v14 = vld [vmem:[%s2268_s5 + $0x144] ss:$8 sps:$4 sm:$0xff]   ;;  %v1592_v16 = vld [vmem:[%s2268_s5 + $0x140] ss:$8 sps:$4 sm:$0xff]  }
  0x12   : > { %v1590_v15 = vld [vmem:[%s2268_s5 + $0x44] ss:$8 sps:$4 sm:$0xff]   ;;  %v1593_v17 = vld [vmem:[%s2268_s5 + $0x40] ss:$8 sps:$4 sm:$0xff]   ;;  %v1594_v18 = vld [vmem:[%s2268_s5 + $0x134] ss:$8 sps:$4 sm:$0xff]  }
  0x13   : > { %709 = vmatpush1.bf16.msra.mxu0 %v1580_v8  ;;  %v1596_v19 = vld [vmem:[%s2268_s5 + $0x34] ss:$8 sps:$4 sm:$0xff]   ;;  %v1598_v20 = vld [vmem:[%s2268_s5 + $0x130] ss:$8 sps:$4 sm:$0xff]   ;;  %v1600_v22 = vld [vmem:[%s2268_s5 + $0x124] ss:$8 sps:$4 sm:$0xff]  }
  0x14   : > { %922 = vmatpush1.bf16.msra.mxu1 %v1581_v9  ;;  %710 = vmatprep.subr.bf16.mxu0 %v1582_v10  ;;  %v1599_v21 = vld [vmem:[%s2268_s5 + $0x30] ss:$8 sps:$4 sm:$0xff]   ;;  %v1602_v23 = vld [vmem:[%s2268_s5 + $0x24] ss:$8 sps:$4 sm:$0xff]   ;;  %v1604_v24 = vld [vmem:[%s2268_s5 + $0x120] ss:$8 sps:$4 sm:$0xff]  }
  0x15   : > { %923 = vmatprep.subr.bf16.mxu1 %v1584_v11  ;;  %v1605_v25 = vld [vmem:[%s2268_s5 + $0x20] ss:$8 sps:$4 sm:$0xff]   ;;  %v1606_v26 = vld [vmem:[%s2268_s5 + $0x114] ss:$8 sps:$4 sm:$0xff]   ;;  %v1610_v28 = vld [vmem:[%s2268_s5 + $0x110] ss:$8 sps:$4 sm:$0xff]  }
  0x16   : > { %v1608_v27 = vld [vmem:[%s2268_s5 + $0x14] ss:$8 sps:$4 sm:$0xff]   ;;  %v1611_v29 = vld [vmem:[%s2268_s5 + $0x10] ss:$8 sps:$4 sm:$0xff]   ;;  %v1612_v30 = vld [vmem:[%s2268_s5 + $0x104] ss:$8 sps:$4 sm:$0xff]  }
  0x17   : > { %711 = vmatpush1.bf16.msra.mxu0 %v1586_v12  ;;  %v1614_v31 = vld [vmem:[%s2268_s5 + $0x4] ss:$8 sps:$4 sm:$0xff]   ;;  %v1616_v32 = vld [vmem:[%s2268_s5 + $0x100] ss:$8 sps:$4 sm:$0xff]   ;;  %v1618_v34 = vld [vmem:[%s2268_s5 + $0x1f4] ss:$8 sps:$4 sm:$0xff]  }
  0x18   : > { %924 = vmatpush1.bf16.msra.mxu1 %v1587_v13  ;;  %712 = vmatprep.subr.bf16.mxu0 %v1588_v14  ;;  %v1617_v33 = vld [vmem:[%s2268_s5] ss:$8 sps:$4 sm:$0xff]   ;;  %v1620_v35 = vld [vmem:[%s2268_s5 + $0xf4] ss:$8 sps:$4 sm:$0xff]   ;;  %v1622_v37 = vld [vmem:[%s2268_s5 + $0x1f0] ss:$8 sps:$4 sm:$0xff]  }
  0x19   : > { %925 = vmatprep.subr.bf16.mxu1 %v1590_v15  ;;  %v1623_v38 = vld [vmem:[%s2268_s5 + $0xf0] ss:$8 sps:$4 sm:$0xff]   ;;  %v1624_v39 = vld [vmem:[%s2268_s5 + $0x1e4] ss:$8 sps:$4 sm:$0xff]   ;;  %s2283_s14 = smov (!%p267_p3, %s1329_s14), 7  ;;  %v1885_v41 = vshrl.u32 %v297_v36, 7 }
  0x1a   : > { %v1626_v40 = vld [vmem:[%s2268_s5 + $0xe4] ss:$8 sps:$4 sm:$0xff]   ;;  %v1628_v42 = vld [vmem:[%s2268_s5 + $0x1e0] ss:$8 sps:$4 sm:$0xff]   ;;  %v1630_v44 = vld [vmem:[%s2268_s5 + $0x1d4] ss:$8 sps:$4 sm:$0xff]  }
  0x1b   : > { %713 = vmatpush1.bf16.msra.mxu0 %v1592_v16  ;;  %v1629_v43 = vld [vmem:[%s2268_s5 + $0xe0] ss:$8 sps:$4 sm:$0xff]   ;;  %v1632_v45 = vld [vmem:[%s2268_s5 + $0xd4] ss:$8 sps:$4 sm:$0xff]   ;;  %s1899_s16 = sshll.u32 %s2283_s14, 4  ;;  %v303_v46 = vsub.s32 1, %v1885_v41 }
  0x1c   : > { %926 = vmatpush1.bf16.msra.mxu1 %v1593_v17  ;;  %714 = vmatprep.subr.bf16.mxu0 %v1594_v18  ;;  %v1634_v47 = vld [vmem:[%s2268_s5 + $0x1d0] ss:$8 sps:$4 sm:$0xff]   ;;  %v295_v48 = vld [vmem:[%s2265_s2] sm:$0x3]  ;;  %v299_v49 = vsub.s32 0, %v1885_v41  ;;  %s1922_s28 = scalar_lea.vmem %s2264_s1, %s1899_s16  ;;  %v371_v8 = vand.u32 15, %v1885_v41  ;;  %s2236_s20 = scalar_lea.vmem %s2263_s0, %s1899_s16 }
  0x1d   : > { %927 = vmatprep.subr.bf16.mxu1 %v1596_v19  ;;  %v1635_v50 = vld [vmem:[%s2268_s5 + $0xd0] ss:$8 sps:$4 sm:$0xff]   ;;  %v1636_v51 = vld [vmem:[%s2268_s5 + $0x1c4] ss:$8 sps:$4 sm:$0xff]   ;;  %v315_v53 = vld [vmem:[%s2266_s3] sm:$0x3]  ;;  %v304_v54 = vrot.slane %v295_v48, %v303_v46  ;;  %s2243_s14 = scalar_lea.vmem %s2269_s6, %s1899_s16 }
  0x1e   : > { %v1638_v52 = vld [vmem:[%s2268_s5 + $0xc4] ss:$8 sps:$4 sm:$0xff]   ;;  %v1640_v55 = vld [vmem:[%s2268_s5 + $0x1c0] ss:$8 sps:$4 sm:$0xff]   ;;  %v300_v56 = vrot.slane %v295_v48, %v299_v49  ;;  %v1642_v58 = vld [vmem:[%s2268_s5 + $0x1b4] ss:$8 sps:$4 sm:$0xff]   ;;  %v324_v62 = vrot.slane %v315_v53, %v303_v46  ;;  %v1945_v7 = vrot.slane %v315_v53, %v299_v49 }
  0x1f   : > { %715 = vmatpush1.bf16.msra.mxu0 %v1598_v20  ;;  %v1641_v57 = vld [vmem:[%s2268_s5 + $0xc0] ss:$8 sps:$4 sm:$0xff]   ;;  %v293_v59 = vld [vmem:[%s1922_s28 + $0x30] sm:$0xff]  ;;  %v290_v61 = vld [vmem:[%s1922_s28 + $0x18] sm:$0xff]  ;;  %v365_v9 = vadd.s32 16, %v1885_v41  ;;  %vm1963_vm0 = vcmp.ne.s32.totalorder %v371_v8, 0 }
  0x20   : > { %928 = vmatpush1.bf16.msra.mxu1 %v1599_v21  ;;  %716 = vmatprep.subr.bf16.mxu0 %v1600_v22  ;;  %v288_v60 = vld [vmem:[%s1922_s28 + $0x8] sm:$0xff]  ;;  %v294_v63 = vld [vmem:[%s1922_s28 + $0x38] sm:$0xff]  ;;  %v310_v2 = vmul.f32 %v304_v54, %v290_v61  ;;  %v287_v4 = vld [vmem:[%s1922_s28] sm:$0xff]  ;;  %v313_v6 = vmul.f32 %v300_v56, %v293_v59  ;;  %vm427_vm1 = vcmp.lt.s32.totalorder %v1885_v41, 1  ;;  %vm456_vm2 = vcmp.lt.s32.totalorder %v1885_v41, 7 }
  0x21   : > { %929 = vmatprep.subr.bf16.mxu1 %v1602_v23  ;;  %v1644_v0 = vld [vmem:[%s2268_s5 + $0xb4] ss:$8 sps:$4 sm:$0xff]   ;;  %v308_v1 = vmul.f32 %v304_v54, %v288_v60  ;;  %v314_v3 = vmul.f32 %v304_v54, %v294_v63  ;;  %v1646_v10 = vld [vmem:[%s2268_s5 + $0x1b0] ss:$8 sps:$4 sm:$0xff]   ;;  %v307_v11 = vmul.f32 %v300_v56, %v287_v4  ;;  %v292_v13 = vld [vmem:[%s1922_s28 + $0x28] sm:$0xff]  ;;  %v385_v23 = vand.u32 15, %v365_v9 }
  0x22   : > { %v289_v5 = vld [vmem:[%s1922_s28 + $0x10] sm:$0xff]  ;;  %v330_v16 = vadd.f32 %v324_v62, %v310_v2  ;;  %v1648_v17 = vld [vmem:[%s2268_s5 + $0x1a4] ss:$8 sps:$4 sm:$0xff]   ;;  %v312_v20 = vmul.f32 %v304_v54, %v292_v13  ;;  %v333_v21 = vadd.f32 %v1945_v7, %v313_v6  ;;  %v1664_v54 = vld [vmem:[%s2268_s5 + $0x180] ss:$8 sps:$4 sm:$0xff]   ;;  %vm1722_vm11 = vmmov 1  }
  0x23   : > { %717 = vmatpush1.bf16.msra.mxu0 %v1604_v24  ;;  %v309_v12 = vmul.f32 %v300_v56, %v289_v5  ;;  %v1647_v14 = vld [vmem:[%s2268_s5 + $0xb0] ss:$8 sps:$4 sm:$0xff]   ;;  %v328_v15 = vadd.f32 %v324_v62, %v308_v1  ;;  %v1650_v18 = vld [vmem:[%s2268_s5 + $0xa4] ss:$8 sps:$4 sm:$0xff]   ;;  %v334_v19 = vadd.f32 %v324_v62, %v314_v3  ;;  %vm1996_vm8 = vcmp.ne.s32.totalorder %v385_v23, 0  ;;  %vm2040_vm12 = vmpackc.low %vm1722_vm11, %vm1963_vm0 }
  0x24   : > { %930 = vmatpush1.bf16.msra.mxu1 %v1605_v25  ;;  %718 = vmatprep.subr.bf16.mxu0 %v1606_v26  ;;  %v291_v24 = vld [vmem:[%s1922_s28 + $0x20] sm:$0xff]  ;;  %vm340_vm4 = vcmp.ge.f32.partialorder %v330_v16, 0.0  ;;  %vm343_vm6 = vcmp.ge.f32.partialorder %v333_v21, 0.0  ;;  %v1668_v5 = vld [vmem:[%s2268_s5 + $0x274] ss:$8 sps:$4 sm:$0xff]   ;;  %vm2081_vm14 = vmpackc.low %vm1722_vm11, %vm1996_vm8 }
  0x25   : > { %931 = vmatprep.subr.bf16.mxu1 %v1608_v27  ;;  %v1652_v25 = vld [vmem:[%s2268_s5 + $0x1a0] ss:$8 sps:$4 sm:$0xff]   ;;  %v327_v27 = vadd.f32 %v1945_v7, %v307_v11  ;;  %vm338_vm3 = vcmp.ge.f32.partialorder %v328_v15, 0.0  ;;  %vm344_vm5 = vcmp.ge.f32.partialorder %v334_v19, 0.0  ;;  %v1660_v46 = vld [vmem:[%s2268_s5 + $0x184] ss:$8 sps:$4 sm:$0xff]  }
  0x26   : > { %v1653_v26 = vld [vmem:[%s2268_s5 + $0xa0] ss:$8 sps:$4 sm:$0xff]   ;;  %v1695_v1 = vld [vmem:[%s2268_s5 + $0x2e4] ss:$8 sps:$4 sm:$0xff]  }
  0x27   : > { %719 = vmatpush1.bf16.msra.mxu0 %v1610_v28  ;;  %v329_v28 = vadd.f32 %v1945_v7, %v309_v12  ;;  %vm337_vm7 = vcmp.ge.f32.partialorder %v327_v27, 0.0  ;;  %v1665_v59 = vld [vmem:[%s2268_s5 + $0x80] ss:$8 sps:$4 sm:$0xff]  }
  0x28   : > { %932 = vmatpush1.bf16.msra.mxu1 %v1611_v29  ;;  %720 = vmatprep.subr.bf16.mxu0 %v1612_v30  ;;  %v1979_v29 = vadd.s32 8, %v1885_v41  ;;  %v1654_v30 = vld [vmem:[%s2268_s5 + $0x194] ss:$8 sps:$4 sm:$0xff]  }
  0x29   : > { %933 = vmatprep.subr.bf16.mxu1 %v1614_v31  ;;  %v1985_v31 = vadd.s32 24, %v1885_v41  ;;  %vm339_vm9 = vcmp.ge.f32.partialorder %v329_v28, 0.0  ;;  %v1677_v41 = vld [vmem:[%s2268_s5 + $0x244] ss:$8 sps:$4 sm:$0xff]  }
  0x2b   : > { %721 = vmatpush1.bf16.msra.mxu0 %v1616_v32 }
  0x2c   : > { %934 = vmatpush1.bf16.msra.mxu1 %v1617_v33  ;;  %722 = vmatprep.subr.bf16.mxu0 %v1618_v34  ;;  %v1656_v33 = vld [vmem:[%s2268_s5 + $0x94] ss:$8 sps:$4 sm:$0xff]   ;;  %v332_v34 = vadd.f32 %v324_v62, %v312_v20  ;;  %v378_v20 = vand.u32 15, %v1979_v29  ;;  %v1671_v29 = vld [vmem:[%s2268_s5 + $0x264] ss:$8 sps:$4 sm:$0xff]  }
  0x2d   : > { %935 = vmatprep.subr.bf16.mxu1 %v1620_v35  ;;  %v311_v35 = vmul.f32 %v300_v56, %v291_v24  ;;  %v392_v24 = vand.u32 15, %v1985_v31 }
  0x2e   : > { %vm342_vm10 = vcmp.ge.f32.partialorder %v332_v34, 0.0  ;;  %vm445_vm15 = vcmp.ne.s32.totalorder %v378_v20, 15 }
  0x2f   : > { %723 = vmatpush2.bf16.msra.mxu0 %v1622_v37  ;;  %v331_v53 = vadd.f32 %v1945_v7, %v311_v35  ;;  %vm447_vm0 = vcmp.ne.s32.totalorder %v392_v24, 15 }
  0x30   : > { %936 = vmatpush2.bf16.msra.mxu1 %v1623_v38  ;;  %724 = vmatprep.subr.bf16.mxu0 %v1624_v39 }
  0x31   : > { %937 = vmatprep.subr.bf16.mxu1 %v1626_v40  ;;  %v1658_v40 = vld [vmem:[%s2268_s5 + $0x190] ss:$8 sps:$4 sm:$0xff]   ;;  %vm341_vm13 = vcmp.ge.f32.partialorder %v331_v53, 0.0 }
  0x33   : > { %725 = vmatpush2.bf16.msra.mxu0 %v1628_v42  ;;  %v1659_v42 = vld [vmem:[%s2268_s5 + $0x90] ss:$8 sps:$4 sm:$0xff]  }
  0x34   : > { %938 = vmatpush2.bf16.msra.mxu1 %v1629_v43  ;;  %726 = vmatprep.subr.bf16.mxu0 %v1630_v44 }
  0x35   : > { %939 = vmatprep.subr.bf16.mxu1 %v1632_v45  ;;  %v1672_v45 = vld [vmem:[%s2268_s5 + $0x250] ss:$8 sps:$4 sm:$0xff]  }
  0x37   : > { %727 = vmatpush2.bf16.msra.mxu0 %v1634_v47  ;;  %v1662_v47 = vld [vmem:[%s2268_s5 + $0x84] ss:$8 sps:$4 sm:$0xff]  }
  0x38   : > { %940 = vmatpush2.bf16.msra.mxu1 %v1635_v50  ;;  %728 = vmatprep.subr.bf16.mxu0 %v1636_v51 }
  0x39   : > { %941 = vmatprep.subr.bf16.mxu1 %v1638_v52 }
  0x3b   : > { %729 = vmatpush2.bf16.msra.mxu0 %v1640_v55 }
  0x3c   : > { %942 = vmatpush2.bf16.msra.mxu1 %v1641_v57  ;;  %730 = vmatprep.subr.bf16.mxu0 %v1642_v58 }
  0x3d   : > { %943 = vmatprep.subr.bf16.mxu1 %v1644_v0 }
  0x3f   : > { %731 = vmatpush2.bf16.msra.mxu0 %v1646_v10  ;;  %s1560_s28 = spop %1559 }
  0x40   : > { %944 = vmatpush2.bf16.msra.mxu1 %v1647_v14  ;;  %732 = vmatprep.subr.bf16.mxu0 %v1648_v17  ;;  %v345_v32 = vstv %s1560_s28 }
  0x41   : > { %945 = vmatprep.subr.bf16.mxu1 %v1650_v18  ;;  %v347_v36 = vmul.f32 %v345_v32, %v328_v15  ;;  %v349_v37 = vmul.f32 %v345_v32, %v330_v16  ;;  %v353_v38 = vmul.f32 %v345_v32, %v334_v19  ;;  %v352_v39 = vmul.f32 %v345_v32, %v333_v21  ;;  %v1666_v18 = vld [vmem:[%s2268_s5 + $0x270] ss:$8 sps:$4 sm:$0xff]  }
  0x42   : > { %v346_v43 = vmul.f32 %v345_v32, %v327_v27  ;;  %v348_v44 = vmul.f32 %v345_v32, %v329_v28  ;;  %v351_v58 = vmul.f32 %v345_v32, %v332_v34  ;;  %v350_v12 = vmul.f32 %v345_v32, %v331_v53 }
  0x43   : > { %733 = vmatpush2.bf16.msra.mxu0 %v1652_v25  ;;  %v2007_v48 = vsel %vm338_vm3, %v328_v15, %v347_v36  ;;  %v2010_v49 = vsel %vm340_vm4, %v330_v16, %v349_v37  ;;  %v2013_v50 = vsel %vm344_vm5, %v334_v19, %v353_v38  ;;  %v2033_v62 = vsel %vm343_vm6, %v333_v21, %v352_v39  ;;  %v1669_v36 = vld [vmem:[%s2268_s5 + $0x260] ss:$8 sps:$4 sm:$0xff]   ;;  %v1674_v39 = vld [vmem:[%s2268_s5 + $0x254] ss:$8 sps:$4 sm:$0xff]   ;;  %vm2134_vm3 = vmpackc.low %vm447_vm0, %vm1722_vm11 }
  0x44   : > { %946 = vmatpush2.bf16.msra.mxu1 %v1653_v26  ;;  %734 = vmatprep.subr.bf16.mxu0 %v1654_v30  ;;  %v420_v51 = vrot.slane %v2007_v48, 7  ;;  %v422_v52 = vrot.slane %v2010_v49, 7  ;;  %v510_v55 = vpack.c.bf16 %v2010_v49, %v2007_v48  ;;  %v426_v56 = vrot.slane %v2013_v50, 7 }
  0x45   : > { %947 = vmatprep.subr.bf16.mxu1 %v1656_v33  ;;  %v354_v57 = vsel %vm337_vm7, %v327_v27, %v346_v43  ;;  %v2030_v61 = vsel %vm339_vm9, %v329_v28, %v348_v44  ;;  %v454_v7 = vrot.slane %v2033_v62, 1  ;;  %v425_v8 = vrot.slane %v2033_v62, 7 }
  0x46   : > { %v433_v60 = vsel %vm427_vm1, %v420_v51, %v422_v52  ;;  %v419_v63 = vrot.slane %v354_v57, 7  ;;  %v435_v0 = vsel %vm427_vm1, %v426_v56, %v420_v51  ;;  %v421_v2 = vrot.slane %v2030_v61, 7  ;;  %738 = vmatprep.mubr.bf16.mxu0 %v510_v55  ;;  %v1680_v55 = vld [vmem:[%s2268_s5 + $0x234] ss:$8 sps:$4 sm:$0xff]  }
  0x47   : > { %735 = vmatpush2.bf16.msra.mxu0 %v1658_v40  ;;  %v448_v3 = vrot.slane %v354_v57, 1  ;;  %v450_v4 = vrot.slane %v2030_v61, 1  ;;  %v1435_v6 = vpack.c.bf16 %v433_v60, %v435_v0  ;;  %v359_v11 = vsel %vm342_vm10, %v332_v34, %v351_v58  ;;  %v1681_v58 = vld [vmem:[%s2268_s5 + $0x220] ss:$8 sps:$4 sm:$0xff]   ;;  %v1684_v60 = vld [vmem:[%s2268_s5 + $0x210] ss:$8 sps:$4 sm:$0xff]  }
  0x48   : > { %948 = vmatpush2.bf16.msra.mxu1 %v1659_v42  ;;  %736 = vmatprep.subr.bf16.mxu0 %v1660_v46  ;;  %v432_v10 = vsel %vm427_vm1, %v419_v63, %v421_v2  ;;  %v509_v14 = vpack.c.bf16 %v2030_v61, %v354_v57  ;;  %v434_v15 = vsel %vm427_vm1, %v425_v8, %v419_v63  ;;  %v424_v16 = vrot.slane %v359_v11, 7  ;;  %v1683_v57 = vld [vmem:[%s2268_s5 + $0x224] ss:$8 sps:$4 sm:$0xff]   ;;  %v1692_v63 = vld [vmem:[%s2268_s5 + $0x2f4] ss:$8 sps:$4 sm:$0xff]  }
  0x49   : > { %949 = vmatprep.subr.bf16.mxu1 %v1662_v47  ;;  %v2053_v9 = vsel %vm456_vm2, %v448_v3, %v450_v4  ;;  %1436 = vmatprep.mubr.msk.bf16.mxu1 %vm2040_vm12, %v1435_v6  ;;  %v2062_v13 = vsel %vm456_vm2, %v454_v7, %v448_v3  ;;  %v1438_v17 = vpack.c.bf16 %v432_v10, %v434_v15  ;;  %v449_v25 = vrot.slane %v2007_v48, 1  ;;  %v1689_v61 = vld [vmem:[%s2268_s5 + $0x204] ss:$8 sps:$4 sm:$0xff]   ;;  %v1690_v0 = vld [vmem:[%s2268_s5 + $0x2f0] ss:$8 sps:$4 sm:$0xff]  }
  0x4a   : > { %v358_v19 = vsel %vm341_vm13, %v331_v53, %v350_v12  ;;  %v429_v21 = vsel %vm427_vm1, %v424_v16, %v426_v56  ;;  %v431_v22 = vsel %vm427_vm1, %v422_v52, %v424_v16  ;;  %v512_v26 = vpack.c.bf16 %v2013_v50, %v359_v11  ;;  %v1678_v56 = vld [vmem:[%s2268_s5 + $0x230] ss:$8 sps:$4 sm:$0xff]   ;;  %v1698_v3 = vld [vmem:[%s2268_s5 + $0x2d4] ss:$8 sps:$4 sm:$0xff]   ;;  %v1699_v6 = vld [vmem:[%s2268_s5 + $0x2c0] ss:$8 sps:$4 sm:$0xff]  }
  0x4b   : > { %737 = vmatpush2.bf16.msra.mxu0 %v1664_v54  ;;  %v452_v23 = vrot.slane %v358_v19, 1  ;;  %v1441_v28 = vpack.c.bf16 %v429_v21, %v431_v22  ;;  %v423_v30 = vrot.slane %v358_v19, 7  ;;  %v451_v32 = vrot.slane %v2010_v49, 1  ;;  %v1675_v54 = vld [vmem:[%s2268_s5 + $0x240] ss:$8 sps:$4 sm:$0xff]  }
  0x4c   : > { %950 = vmatpush2.bf16.msra.mxu1 %v1665_v59  ;;  %1169 = vmatprep.subr.bf16.mxu0 %v1668_v5  ;;  %v453_v31 = vrot.slane %v359_v11, 1  ;;  %v455_v35 = vrot.slane %v2013_v50, 1  ;;  %v511_v48 = vpack.c.bf16 %v2033_v62, %v358_v19  ;;  %v1686_v59 = vld [vmem:[%s2268_s5 + $0x214] ss:$8 sps:$4 sm:$0xff]   ;;  %v1687_v62 = vld [vmem:[%s2268_s5 + $0x200] ss:$8 sps:$4 sm:$0xff]  }
  0x4d   : > { %1527 = vmatprep.subr.bf16.mxu1 %v1668_v5  ;;  %v2093_v33 = vsel %vm456_vm2, %v452_v23, %v454_v7  ;;  %v2097_v34 = vsel %vm456_vm2, %v450_v4, %v452_v23  ;;  %v428_v40 = vsel %vm427_vm1, %v423_v30, %v425_v8  ;;  %v430_v42 = vsel %vm427_vm1, %v421_v2, %v423_v30  ;;  %vm2129_vm1 = vmpackc.low %vm445_vm15, %vm1722_vm11  ;;  %v1693_v2 = vld [vmem:[%s2268_s5 + $0x2e0] ss:$8 sps:$4 sm:$0xff]   ;;  %v1696_v4 = vld [vmem:[%s2268_s5 + $0x2d0] ss:$8 sps:$4 sm:$0xff]  }
  0x4e   : > { %739 = vmatmul.mubr.bf16.vlgmr.msra.gmra.mxu0 %v509_v14  ;;  %v1514_v37 = vpack.c.bf16 %v2097_v34, %v2053_v9  ;;  %v1520_v38 = vpack.c.bf16 %v2062_v13, %v2093_v33  ;;  %v460_v43 = vsel %vm456_vm2, %v451_v32, %v453_v31  ;;  %v462_v44 = vsel %vm456_vm2, %v449_v25, %v451_v32  ;;  %v1701_v5 = vld [vmem:[%s2268_s5 + $0x2c4] ss:$8 sps:$4 sm:$0xff]   ;;  %v1704_v7 = vld [vmem:[%s2268_s5 + $0x2b4] ss:$8 sps:$4 sm:$0xff]   ;;  %v1702_v8 = vld [vmem:[%s2268_s5 + $0x2b0] ss:$8 sps:$4 sm:$0xff]  }
  0x4f   : > { %1439 = vmatmul.mubr.msk.bf16.vlgmr.msra.gmra.mxu1 %vm2040_vm12, %v1438_v17  ;;  %748 = vmatprep.mubr.bf16.mxu0 %v512_v26  ;;  %v458_v46 = vsel %vm456_vm2, %v453_v31, %v455_v35  ;;  %v464_v47 = vsel %vm456_vm2, %v455_v35, %v449_v25  ;;  %v1444_v49 = vpack.c.bf16 %v428_v40, %v430_v42  ;;  %v1707_v10 = vld [vmem:[%s2268_s5 + $0x2a4] ss:$8 sps:$4 sm:$0xff]   ;;  %v1705_v11 = vld [vmem:[%s2268_s5 + $0x2a0] ss:$8 sps:$4 sm:$0xff]   ;;  %v1710_v12 = vld [vmem:[%s2268_s5 + $0x294] ss:$8 sps:$4 sm:$0xff]  }
  0x50   : > { %1170 = vmatpush1.bf16.msra.mxu0 %v1666_v18  ;;  %1543 = vmatpush1.bf16.msra.mxu1 %v1666_v18  ;;  %v1511_v51 = vpack.c.bf16 %v460_v43, %v462_v44  ;;  %v1517_v53 = vpack.c.bf16 %v464_v47, %v458_v46  ;;  %v1708_v14 = vld [vmem:[%s2268_s5 + $0x290] ss:$8 sps:$4 sm:$0xff]   ;;  %v1713_v15 = vld [vmem:[%s2268_s5 + $0x284] ss:$8 sps:$4 sm:$0xff]   ;;  %v1711_v16 = vld [vmem:[%s2268_s5 + $0x280] ss:$8 sps:$4 sm:$0xff]  }
  0x51   : > { %1442 = vmatprep.mubr.msk.bf16.mxu1 %vm2081_vm14, %v1441_v28  ;;  %1171 = vmatprep.subr.bf16.mxu0 %v1671_v29  ;;  %v1230_v33 = vld [vmem:[%s2236_s20] sm:$0xff] }
  0x52   : > { %1528 = vmatprep.subr.bf16.mxu1 %v1671_v29 }
  0x54   : > { %1172 = vmatpush1.bf16.msra.mxu0 %v1669_v36  ;;  %1544 = vmatpush1.bf16.msra.mxu1 %v1669_v36 }
  0x55   : > { %1173 = vmatprep.subr.bf16.mxu0 %v1674_v39  ;;  %1529 = vmatprep.subr.bf16.mxu1 %v1674_v39  ;;  %v1231_v39 = vld [vmem:[%s2236_s20 + $0x8] sm:$0xff] }
  0x56   : > { %749 = vmatmul.mubr.bf16.gmra.mxu0 %v511_v48 }
  0x57   : > { %1445 = vmatmul.mubr.msk.bf16.gmra.mxu1 %vm2081_vm14, %v1444_v49  ;;  %1512 = vmatprep.mubr.msk.bf16.mxu0 %vm2129_vm1, %v1511_v51  ;;  %v1232_v49 = vld [vmem:[%s2236_s20 + $0x10] sm:$0xff]  ;;  %v1234_v51 = vld [vmem:[%s2236_s20 + $0x20] sm:$0xff] }
  0x58   : > { %1174 = vmatpush1.bf16.msra.mxu0 %v1672_v45  ;;  %1545 = vmatpush1.bf16.msra.mxu1 %v1672_v45 }
  0x59   : > { %1518 = vmatprep.mubr.msk.bf16.mxu1 %vm2134_vm3, %v1517_v53  ;;  %1175 = vmatprep.subr.bf16.mxu0 %v1677_v41 }
  0x5a   : > { %1530 = vmatprep.subr.bf16.mxu1 %v1677_v41 }
  0x5c   : > { %1176 = vmatpush1.bf16.msra.mxu0 %v1675_v54  ;;  %1546 = vmatpush1.bf16.msra.mxu1 %v1675_v54 }
  0x5d   : > { %1177 = vmatprep.subr.bf16.mxu0 %v1680_v55  ;;  %1531 = vmatprep.subr.bf16.mxu1 %v1680_v55 }
  0x60   : > { %1178 = vmatpush1.bf16.msra.mxu0 %v1678_v56  ;;  %1547 = vmatpush1.bf16.msra.mxu1 %v1678_v56 }
  0x61   : > { %1179 = vmatprep.subr.bf16.mxu0 %v1683_v57  ;;  %1532 = vmatprep.subr.bf16.mxu1 %v1683_v57  ;;  %v1236_v57 = vld [vmem:[%s2236_s20 + $0x30] sm:$0xff] }
  0x64   : > { %1180 = vmatpush1.bf16.msra.mxu0 %v1681_v58  ;;  %1548 = vmatpush1.bf16.msra.mxu1 %v1681_v58 }
  0x65   : > { %1181 = vmatprep.subr.bf16.mxu0 %v1686_v59  ;;  %1533 = vmatprep.subr.bf16.mxu1 %v1686_v59  ;;  %v1233_v59 = vld [vmem:[%s2236_s20 + $0x18] sm:$0xff] }
  0x68   : > { %1182 = vmatpush1.bf16.msra.mxu0 %v1684_v60  ;;  %1549 = vmatpush1.bf16.msra.mxu1 %v1684_v60  ;;  %v1235_v60 = vld [vmem:[%s2236_s20 + $0x28] sm:$0xff] }
  0x69   : > { %1183 = vmatprep.subr.bf16.mxu0 %v1689_v61  ;;  %1534 = vmatprep.subr.bf16.mxu1 %v1689_v61 }
  0x6c   : > { %1184 = vmatpush1.bf16.msra.mxu0 %v1687_v62  ;;  %1550 = vmatpush1.bf16.msra.mxu1 %v1687_v62 }
  0x6d   : > { %1185 = vmatprep.subr.bf16.mxu0 %v1692_v63  ;;  %1535 = vmatprep.subr.bf16.mxu1 %v1692_v63 }
  0x70   : > { %1186 = vmatpush2.bf16.msra.mxu0 %v1690_v0  ;;  %1551 = vmatpush2.bf16.msra.mxu1 %v1690_v0 }
  0x71   : > { %1187 = vmatprep.subr.bf16.mxu0 %v1695_v1  ;;  %1536 = vmatprep.subr.bf16.mxu1 %v1695_v1 }
  0x74   : > { %1188 = vmatpush2.bf16.msra.mxu0 %v1693_v2  ;;  %1552 = vmatpush2.bf16.msra.mxu1 %v1693_v2  ;;  %v1237_v2 = vld [vmem:[%s2236_s20 + $0x38] sm:$0xff] }
  0x75   : > { %1189 = vmatprep.subr.bf16.mxu0 %v1698_v3  ;;  %1537 = vmatprep.subr.bf16.mxu1 %v1698_v3 }
  0x78   : > { %1190 = vmatpush2.bf16.msra.mxu0 %v1696_v4  ;;  %1553 = vmatpush2.bf16.msra.mxu1 %v1696_v4 }
  0x79   : > { %1191 = vmatprep.subr.bf16.mxu0 %v1701_v5  ;;  %1538 = vmatprep.subr.bf16.mxu1 %v1701_v5 }
  0x7c   : > { %1192 = vmatpush2.bf16.msra.mxu0 %v1699_v6  ;;  %1554 = vmatpush2.bf16.msra.mxu1 %v1699_v6 }
  0x7d   : > { %1193 = vmatprep.subr.bf16.mxu0 %v1704_v7  ;;  %1539 = vmatprep.subr.bf16.mxu1 %v1704_v7 }
  0x80   : > { %1194 = vmatpush2.bf16.msra.mxu0 %v1702_v8  ;;  %1555 = vmatpush2.bf16.msra.mxu1 %v1702_v8 }
  0x81   : > { %1195 = vmatprep.subr.bf16.mxu0 %v1707_v10  ;;  %1540 = vmatprep.subr.bf16.mxu1 %v1707_v10 }
  0x84   : > { %1196 = vmatpush2.bf16.msra.mxu0 %v1705_v11  ;;  %1556 = vmatpush2.bf16.msra.mxu1 %v1705_v11 }
  0x85   : > { %1197 = vmatprep.subr.bf16.mxu0 %v1710_v12  ;;  %1541 = vmatprep.subr.bf16.mxu1 %v1710_v12 }
  0x88   : > { %1198 = vmatpush2.bf16.msra.mxu0 %v1708_v14  ;;  %1557 = vmatpush2.bf16.msra.mxu1 %v1708_v14 }
  0x89   : > { %1199 = vmatprep.subr.bf16.mxu0 %v1713_v15  ;;  %1542 = vmatprep.subr.bf16.mxu1 %v1713_v15 }
  0x8c   : > { %1200 = vmatpush2.bf16.msra.mxu0 %v1711_v16  ;;  %1558 = vmatpush2.bf16.msra.mxu1 %v1711_v16 }
  0x8f   : > { %1515 = vmatmul.mubr.msk.bf16.vlgmr.msra.gmra.mxu0 %vm2129_vm1, %v1514_v37  ;;  %1521 = vmatmul.mubr.msk.bf16.vlgmr.msra.gmra.mxu1 %vm2134_vm3, %v1520_v38 }
 0x10e   : > { %v740_v17 = vpop.f32.mrf.mxu0 }
 0x10f   : > { %v953_v18 = vpop.f32.mrf.mxu1 }
 0x110   : > { %v742_v19 = vpop.f32.mrf.mxu0  ;;  %v954_v30 = vadd.f32 %v953_v18, %v740_v17 }
 0x111   : > { %v955_v20 = vpop.f32.mrf.mxu1 }
 0x112   : > { %v744_v21 = vpop.f32.mrf.mxu0  ;;  %v956_v34 = vadd.f32 %v955_v20, %v742_v19 }
 0x113   : > { %v957_v22 = vpop.f32.mrf.mxu1 }
 0x114   : > { %v746_v23 = vpop.f32.mrf.mxu0  ;;  %v958_v40 = vadd.f32 %v957_v22, %v744_v21 }
 0x115   : > { %v959_v24 = vpop.f32.mrf.mxu1 }
 0x116   : > { %v750_v25 = vpop.f32.mrf.mxu0  ;;  %v960_v50 = vadd.f32 %v959_v24, %v746_v23 }
 0x117   : > { %v963_v9 = vpop.f32.mrf.mxu1 }
 0x118   : > { %v752_v26 = vpop.f32.mrf.mxu0  ;;  %v964_v37 = vadd.f32 %v963_v9, %v750_v25 }
 0x119   : > { %v965_v27 = vpop.f32.mrf.mxu1 }
 0x11a   : > { %v754_v28 = vpop.f32.mrf.mxu0  ;;  %v966_v45 = vadd.f32 %v965_v27, %v752_v26 }
 0x11b   : > { %v967_v29 = vpop.f32.mrf.mxu1 }
 0x11c   : > { %v756_v13 = vpop.f32.mrf.mxu0  ;;  %v968_v46 = vadd.f32 %v967_v29, %v754_v28 }
 0x11d   : > { %v969_v32 = vpop.f32.mrf.mxu1 }
 0x11e   : > { %v970_v54 = vadd.f32 %v969_v32, %v756_v13 }
 0x14f   : > { %v1203_v31 = vpop.f32.mrf.mxu0  ;;  %v1213_v36 = vpop.f32.mrf.mxu1 }
 0x150   : > { %v1222_v35 = vadd.f32 %v1203_v31, %v954_v30  ;;  %v1226_v47 = vadd.f32 %v1213_v36, %v964_v37 }
 0x151   : > { %v1205_v38 = vpop.f32.mrf.mxu0  ;;  %v1215_v44 = vpop.f32.mrf.mxu1 }
 0x152   : > { %v1238_v42 = vadd.f32 %v1230_v33, %v1222_v35  ;;  %v1223_v43 = vadd.f32 %v1205_v38, %v956_v34  ;;  %v1227_v55 = vadd.f32 %v1215_v44, %v966_v45  ;;  %v1242_v0 = vadd.f32 %v1234_v51, %v1226_v47 }
 0x153   : > { %v1207_v48 = vpop.f32.mrf.mxu0  ;;  %v1217_v53 = vpop.f32.mrf.mxu1 }
 0x154   : > { %1246 = vst [vmem:[%s2243_s14] sm:$0xff] %v1238_v42  ;;  %v1239_v52 = vadd.f32 %v1231_v39, %v1223_v43  ;;  %v1224_v41 = vadd.f32 %v1207_v48, %v958_v40  ;;  %v1228_v56 = vadd.f32 %v1217_v53, %v968_v46  ;;  %v1243_v5 = vadd.f32 %v1235_v60, %v1227_v55 }
 0x155   : > { %v1209_v58 = vpop.f32.mrf.mxu0  ;;  %v1219_v63 = vpop.f32.mrf.mxu1  ;;  %1250 = vst [vmem:[%s2243_s14 + $0x20] sm:$0xff] %v1242_v0 }
 0x156   : > { %1247 = vst [vmem:[%s2243_s14 + $0x8] sm:$0xff] %v1239_v52  ;;  %v1240_v61 = vadd.f32 %v1232_v49, %v1224_v41  ;;  %v1225_v62 = vadd.f32 %v1209_v58, %v960_v50  ;;  %v1229_v1 = vadd.f32 %v1219_v63, %v970_v54  ;;  %v1244_v3 = vadd.f32 %v1236_v57, %v1228_v56 }
 0x157   : > { %1251 = vst [vmem:[%s2243_s14 + $0x28] sm:$0xff] %v1243_v5 }
 0x158   : > { %1248 = vst [vmem:[%s2243_s14 + $0x10] sm:$0xff] %v1240_v61  ;;  %v1241_v4 = vadd.f32 %v1233_v59, %v1225_v62  ;;  %1252 = vst [vmem:[%s2243_s14 + $0x30] sm:$0xff] %v1244_v3  ;;  %v1245_v6 = vadd.f32 %v1237_v2, %v1229_v1 }
 0x15a   : > { %1249 = vst [vmem:[%s2243_s14 + $0x18] sm:$0xff] %v1241_v4  ;;  %1253 = vst [vmem:[%s2243_s14 + $0x38] sm:$0xff] %v1245_v6 }
 0x15b PF: > { %s18_s23 = sadd.s32 1, %s1720_s23  }
 0x15c   : > { %p15_p4 = scmp.ge.s32.totalorder %s18_s23, 4  }
 0x15e   :  { %17 = sbr.rel (!%p15_p4) target bundleno = 3 (0x3), region = 79 }

// kernel: resblock_forward_nhwc.4
= control target key start
LH: loop header
LB: loop body
LE: loop exit
PB: predicated region body
PF: predicated region fallthrough
CT: control target
= control target key end

     0   :  { %s1813_s23 = smov 0   ;;  %s2311_s0 = inlined_call_operand.vmem [shape: f32[64,256], index: 0, kind: input, shape index: {}]   ;;  %s2312_s1 = inlined_call_operand.vmem [shape: f32[1,256], index: 1, kind: input, shape index: {}]   ;;  %s2313_s2 = inlined_call_operand.vmem [shape: f32[1,256], index: 2, kind: input, shape index: {}]   ;;  %s2314_s3 = inlined_call_operand.<no memory space> [shape: f32[1,1], index: 3, kind: input, shape index: {}]   ;;  %s2315_s4 = inlined_call_operand.vmem [shape: bf16[3,256,256], index: 4, kind: input, shape index: {}]   ;;  %s2316_s5 = inlined_call_operand.vmem [shape: f32[64,256], index: 5, kind: output, shape index: {0}]   ;;  %s2317_s6 = inlined_call_operand.vmem [shape: f32[2,2,256], index: 6, kind: output, shape index: {1}]  }
   0x1   :  { %v12_v0 = vstv %s2314_s3 }
   0x2   :  { %13 = vst [vmem:[#allocation2] sm:$0x1] %v12_v0 }
   0x3 LB: > { %s1819_s24 = sadd.s32 4294967295, %s1772_s23   ;;  %p1380_p0 = scmp.ge.s32.totalorder %s1772_s23, 1  ;;  %s1772_s23 = sphi %s1813_s23, %s19_s23  }
   0x4   : > { %p219_p1 = scmp.lt.s32.totalorder %s1772_s23, 3 }
   0x6   : > { %p220_p2 = pnand %p1380_p0, %p219_p1 }
   0x7   : > { %s1381_s14 = sshll.u32 (!%p220_p2), %s1819_s24, 2  ;;  %p270_p4 = scmp.lt.s32.totalorder (!%p220_p2), %s1819_s24, 1 }
   0x8   : > { %223 = sbr.rel (%p220_p2) target bundleno = 368 (0x170), region = 40  ;;  %p257_p3 = scmp.lt.s32.totalorder (!%p220_p2), %s1381_s14, 7 }
   0xd   : > { %v1622_v1 = vld [vmem:[%s2315_s4 + $0x174] ss:$8 sps:$4 sm:$0xff]   ;;  %v1626_v3 = vld [vmem:[%s2315_s4 + $0x170] ss:$8 sps:$4 sm:$0xff]   ;;  %v323_v5 = vld [vmem:[#allocation2] sm:$0x1]  ;;  %v285_v36 = vlaneseq }
   0xe   : > { %v1624_v2 = vld [vmem:[%s2315_s4 + $0x74] ss:$8 sps:$4 sm:$0xff]   ;;  %694 = vmatprep.subr.bf16.mxu0 %v1622_v1  ;;  %v1627_v4 = vld [vmem:[%s2315_s4 + $0x70] ss:$8 sps:$4 sm:$0xff]   ;;  %1611 = vpush %v323_v5  ;;  %v1628_v6 = vld [vmem:[%s2315_s4 + $0x164] ss:$8 sps:$4 sm:$0xff]  }
   0xf   : > { %907 = vmatprep.subr.bf16.mxu1 %v1624_v2  ;;  %695 = vmatpush1.bf16.msra.mxu0 %v1626_v3  ;;  %v1630_v7 = vld [vmem:[%s2315_s4 + $0x64] ss:$8 sps:$4 sm:$0xff]   ;;  %v1632_v8 = vld [vmem:[%s2315_s4 + $0x160] ss:$8 sps:$4 sm:$0xff]   ;;  %v1634_v10 = vld [vmem:[%s2315_s4 + $0x154] ss:$8 sps:$4 sm:$0xff]  }
  0x10   : > { %908 = vmatpush1.bf16.msra.mxu1 %v1627_v4  ;;  %696 = vmatprep.subr.bf16.mxu0 %v1628_v6  ;;  %v1633_v9 = vld [vmem:[%s2315_s4 + $0x60] ss:$8 sps:$4 sm:$0xff]   ;;  %v1636_v11 = vld [vmem:[%s2315_s4 + $0x54] ss:$8 sps:$4 sm:$0xff]   ;;  %v1638_v12 = vld [vmem:[%s2315_s4 + $0x150] ss:$8 sps:$4 sm:$0xff]  }
  0x11   : > { %909 = vmatprep.subr.bf16.mxu1 %v1630_v7  ;;  %v1639_v13 = vld [vmem:[%s2315_s4 + $0x50] ss:$8 sps:$4 sm:$0xff]   ;;  %v1640_v14 = vld [vmem:[%s2315_s4 + $0x144] ss:$8 sps:$4 sm:$0xff]   ;;  %v1644_v16 = vld [vmem:[%s2315_s4 + $0x140] ss:$8 sps:$4 sm:$0xff]  }
  0x12   : > { %v1642_v15 = vld [vmem:[%s2315_s4 + $0x44] ss:$8 sps:$4 sm:$0xff]   ;;  %v1645_v17 = vld [vmem:[%s2315_s4 + $0x40] ss:$8 sps:$4 sm:$0xff]   ;;  %v1646_v18 = vld [vmem:[%s2315_s4 + $0x134] ss:$8 sps:$4 sm:$0xff]  }
  0x13   : > { %697 = vmatpush1.bf16.msra.mxu0 %v1632_v8  ;;  %v1648_v19 = vld [vmem:[%s2315_s4 + $0x34] ss:$8 sps:$4 sm:$0xff]   ;;  %v1650_v20 = vld [vmem:[%s2315_s4 + $0x130] ss:$8 sps:$4 sm:$0xff]   ;;  %v1652_v22 = vld [vmem:[%s2315_s4 + $0x124] ss:$8 sps:$4 sm:$0xff]  }
  0x14   : > { %910 = vmatpush1.bf16.msra.mxu1 %v1633_v9  ;;  %698 = vmatprep.subr.bf16.mxu0 %v1634_v10  ;;  %v1651_v21 = vld [vmem:[%s2315_s4 + $0x30] ss:$8 sps:$4 sm:$0xff]   ;;  %v1654_v23 = vld [vmem:[%s2315_s4 + $0x24] ss:$8 sps:$4 sm:$0xff]   ;;  %v1656_v24 = vld [vmem:[%s2315_s4 + $0x120] ss:$8 sps:$4 sm:$0xff]  }
  0x15   : > { %911 = vmatprep.subr.bf16.mxu1 %v1636_v11  ;;  %v1657_v25 = vld [vmem:[%s2315_s4 + $0x20] ss:$8 sps:$4 sm:$0xff]   ;;  %v1658_v26 = vld [vmem:[%s2315_s4 + $0x114] ss:$8 sps:$4 sm:$0xff]   ;;  %v1662_v28 = vld [vmem:[%s2315_s4 + $0x110] ss:$8 sps:$4 sm:$0xff]  }
  0x16   : > { %v1660_v27 = vld [vmem:[%s2315_s4 + $0x14] ss:$8 sps:$4 sm:$0xff]   ;;  %v1663_v29 = vld [vmem:[%s2315_s4 + $0x10] ss:$8 sps:$4 sm:$0xff]   ;;  %v1664_v30 = vld [vmem:[%s2315_s4 + $0x104] ss:$8 sps:$4 sm:$0xff]  }
  0x17   : > { %699 = vmatpush1.bf16.msra.mxu0 %v1638_v12  ;;  %v1666_v31 = vld [vmem:[%s2315_s4 + $0x4] ss:$8 sps:$4 sm:$0xff]   ;;  %v1668_v32 = vld [vmem:[%s2315_s4 + $0x100] ss:$8 sps:$4 sm:$0xff]   ;;  %v1670_v34 = vld [vmem:[%s2315_s4 + $0x1f4] ss:$8 sps:$4 sm:$0xff]  }
  0x18   : > { %912 = vmatpush1.bf16.msra.mxu1 %v1639_v13  ;;  %700 = vmatprep.subr.bf16.mxu0 %v1640_v14  ;;  %v1669_v33 = vld [vmem:[%s2315_s4] ss:$8 sps:$4 sm:$0xff]   ;;  %v1672_v35 = vld [vmem:[%s2315_s4 + $0xf4] ss:$8 sps:$4 sm:$0xff]   ;;  %v1674_v37 = vld [vmem:[%s2315_s4 + $0x1f0] ss:$8 sps:$4 sm:$0xff]  }
  0x19   : > { %913 = vmatprep.subr.bf16.mxu1 %v1642_v15  ;;  %v1675_v38 = vld [vmem:[%s2315_s4 + $0xf0] ss:$8 sps:$4 sm:$0xff]   ;;  %v1676_v39 = vld [vmem:[%s2315_s4 + $0x1e4] ss:$8 sps:$4 sm:$0xff]   ;;  %s2331_s14 = smov (!%p257_p3, %s1381_s14), 7  ;;  %v1940_v41 = vshrl.u32 %v285_v36, 7 }
  0x1a   : > { %v1678_v40 = vld [vmem:[%s2315_s4 + $0xe4] ss:$8 sps:$4 sm:$0xff]   ;;  %v1680_v42 = vld [vmem:[%s2315_s4 + $0x1e0] ss:$8 sps:$4 sm:$0xff]   ;;  %v1682_v44 = vld [vmem:[%s2315_s4 + $0x1d4] ss:$8 sps:$4 sm:$0xff]  }
  0x1b   : > { %701 = vmatpush1.bf16.msra.mxu0 %v1644_v16  ;;  %v1681_v43 = vld [vmem:[%s2315_s4 + $0xe0] ss:$8 sps:$4 sm:$0xff]   ;;  %v1684_v45 = vld [vmem:[%s2315_s4 + $0xd4] ss:$8 sps:$4 sm:$0xff]   ;;  %s1576_s17 = sshll.u32 %s2331_s14, 4  ;;  %v291_v46 = vsub.s32 1, %v1940_v41 }
  0x1c   : > { %914 = vmatpush1.bf16.msra.mxu1 %v1645_v17  ;;  %702 = vmatprep.subr.bf16.mxu0 %v1646_v18  ;;  %v1686_v47 = vld [vmem:[%s2315_s4 + $0x1d0] ss:$8 sps:$4 sm:$0xff]   ;;  %v283_v48 = vld [vmem:[%s2312_s1] sm:$0x3]  ;;  %v287_v49 = vsub.s32 0, %v1940_v41  ;;  %s1977_s7 = scalar_lea.vmem %s2311_s0, %s1576_s17  ;;  %v359_v8 = vand.u32 15, %v1940_v41  ;;  %s2293_s9 = scalar_lea.vmem %s2316_s5, %s1576_s17 }
  0x1d   : > { %915 = vmatprep.subr.bf16.mxu1 %v1648_v19  ;;  %v1687_v50 = vld [vmem:[%s2315_s4 + $0xd0] ss:$8 sps:$4 sm:$0xff]   ;;  %v1688_v51 = vld [vmem:[%s2315_s4 + $0x1c4] ss:$8 sps:$4 sm:$0xff]   ;;  %v303_v53 = vld [vmem:[%s2313_s2] sm:$0x3]  ;;  %v292_v54 = vrot.slane %v283_v48, %v291_v46 }
  0x1e   : > { %v1690_v52 = vld [vmem:[%s2315_s4 + $0xc4] ss:$8 sps:$4 sm:$0xff]   ;;  %v1692_v55 = vld [vmem:[%s2315_s4 + $0x1c0] ss:$8 sps:$4 sm:$0xff]   ;;  %v288_v56 = vrot.slane %v283_v48, %v287_v49  ;;  %v1694_v58 = vld [vmem:[%s2315_s4 + $0x1b4] ss:$8 sps:$4 sm:$0xff]   ;;  %v312_v62 = vrot.slane %v303_v53, %v291_v46  ;;  %v2000_v7 = vrot.slane %v303_v53, %v287_v49 }
  0x1f   : > { %703 = vmatpush1.bf16.msra.mxu0 %v1650_v20  ;;  %v1693_v57 = vld [vmem:[%s2315_s4 + $0xc0] ss:$8 sps:$4 sm:$0xff]   ;;  %v281_v59 = vld [vmem:[%s1977_s7 + $0x30] sm:$0xff]  ;;  %v278_v61 = vld [vmem:[%s1977_s7 + $0x18] sm:$0xff]  ;;  %v353_v9 = vadd.s32 16, %v1940_v41  ;;  %vm2018_vm0 = vcmp.ne.s32.totalorder %v359_v8, 0 }
  0x20   : > { %916 = vmatpush1.bf16.msra.mxu1 %v1651_v21  ;;  %704 = vmatprep.subr.bf16.mxu0 %v1652_v22  ;;  %v276_v60 = vld [vmem:[%s1977_s7 + $0x8] sm:$0xff]  ;;  %v282_v63 = vld [vmem:[%s1977_s7 + $0x38] sm:$0xff]  ;;  %v298_v2 = vmul.f32 %v292_v54, %v278_v61  ;;  %v275_v4 = vld [vmem:[%s1977_s7] sm:$0xff]  ;;  %v301_v6 = vmul.f32 %v288_v56, %v281_v59  ;;  %vm415_vm1 = vcmp.lt.s32.totalorder %v1940_v41, 1  ;;  %vm444_vm2 = vcmp.lt.s32.totalorder %v1940_v41, 7  ;;  %s2333_s24 = smov (!%p270_p4, %s1819_s24), 1 }
  0x21   : > { %917 = vmatprep.subr.bf16.mxu1 %v1654_v23  ;;  %v1696_v0 = vld [vmem:[%s2315_s4 + $0xb4] ss:$8 sps:$4 sm:$0xff]   ;;  %v296_v1 = vmul.f32 %v292_v54, %v276_v60  ;;  %v302_v3 = vmul.f32 %v292_v54, %v282_v63  ;;  %v1698_v10 = vld [vmem:[%s2315_s4 + $0x1b0] ss:$8 sps:$4 sm:$0xff]   ;;  %v295_v11 = vmul.f32 %v288_v56, %v275_v4  ;;  %v280_v13 = vld [vmem:[%s1977_s7 + $0x28] sm:$0xff]  ;;  %v373_v23 = vand.u32 15, %v353_v9 }
  0x22   : > { %v277_v5 = vld [vmem:[%s1977_s7 + $0x10] sm:$0xff]  ;;  %v318_v16 = vadd.f32 %v312_v62, %v298_v2  ;;  %v1700_v17 = vld [vmem:[%s2315_s4 + $0x1a4] ss:$8 sps:$4 sm:$0xff]   ;;  %v300_v20 = vmul.f32 %v292_v54, %v280_v13  ;;  %v321_v21 = vadd.f32 %v2000_v7, %v301_v6  ;;  %v1716_v54 = vld [vmem:[%s2315_s4 + $0x180] ss:$8 sps:$4 sm:$0xff]   ;;  %vm1774_vm11 = vmmov 1  }
  0x23   : > { %705 = vmatpush1.bf16.msra.mxu0 %v1656_v24  ;;  %v297_v12 = vmul.f32 %v288_v56, %v277_v5  ;;  %v1699_v14 = vld [vmem:[%s2315_s4 + $0xb0] ss:$8 sps:$4 sm:$0xff]   ;;  %v316_v15 = vadd.f32 %v312_v62, %v296_v1  ;;  %v1702_v18 = vld [vmem:[%s2315_s4 + $0xa4] ss:$8 sps:$4 sm:$0xff]   ;;  %v322_v19 = vadd.f32 %v312_v62, %v302_v3  ;;  %vm2051_vm8 = vcmp.ne.s32.totalorder %v373_v23, 0  ;;  %vm2095_vm12 = vmpackc.low %vm1774_vm11, %vm2018_vm0  ;;  %s1578_s14 = sshll.u32 %s2333_s24, 2 }
  0x24   : > { %918 = vmatpush1.bf16.msra.mxu1 %v1657_v25  ;;  %706 = vmatprep.subr.bf16.mxu0 %v1658_v26  ;;  %v279_v24 = vld [vmem:[%s1977_s7 + $0x20] sm:$0xff]  ;;  %vm328_vm4 = vcmp.ge.f32.partialorder %v318_v16, 0.0  ;;  %vm331_vm6 = vcmp.ge.f32.partialorder %v321_v21, 0.0  ;;  %v1720_v5 = vld [vmem:[%s2315_s4 + $0x274] ss:$8 sps:$4 sm:$0xff]   ;;  %vm2136_vm14 = vmpackc.low %vm1774_vm11, %vm2051_vm8  ;;  %s274_s10 = scalar_lea.vmem %s2317_s6, %s1578_s14 }
  0x25   : > { %919 = vmatprep.subr.bf16.mxu1 %v1660_v27  ;;  %v1704_v25 = vld [vmem:[%s2315_s4 + $0x1a0] ss:$8 sps:$4 sm:$0xff]   ;;  %v315_v27 = vadd.f32 %v2000_v7, %v295_v11  ;;  %vm326_vm3 = vcmp.ge.f32.partialorder %v316_v15, 0.0  ;;  %vm332_vm5 = vcmp.ge.f32.partialorder %v322_v19, 0.0  ;;  %v1712_v46 = vld [vmem:[%s2315_s4 + $0x184] ss:$8 sps:$4 sm:$0xff]  }
  0x26   : > { %v1705_v26 = vld [vmem:[%s2315_s4 + $0xa0] ss:$8 sps:$4 sm:$0xff]   ;;  %v1747_v1 = vld [vmem:[%s2315_s4 + $0x2e4] ss:$8 sps:$4 sm:$0xff]  }
  0x27   : > { %707 = vmatpush1.bf16.msra.mxu0 %v1662_v28  ;;  %v317_v28 = vadd.f32 %v2000_v7, %v297_v12  ;;  %vm325_vm7 = vcmp.ge.f32.partialorder %v315_v27, 0.0  ;;  %v1717_v59 = vld [vmem:[%s2315_s4 + $0x80] ss:$8 sps:$4 sm:$0xff]  }
  0x28   : > { %920 = vmatpush1.bf16.msra.mxu1 %v1663_v29  ;;  %708 = vmatprep.subr.bf16.mxu0 %v1664_v30  ;;  %v2034_v29 = vadd.s32 8, %v1940_v41  ;;  %v1706_v30 = vld [vmem:[%s2315_s4 + $0x194] ss:$8 sps:$4 sm:$0xff]  }
  0x29   : > { %921 = vmatprep.subr.bf16.mxu1 %v1666_v31  ;;  %v2040_v31 = vadd.s32 24, %v1940_v41  ;;  %vm327_vm9 = vcmp.ge.f32.partialorder %v317_v28, 0.0  ;;  %v1729_v41 = vld [vmem:[%s2315_s4 + $0x244] ss:$8 sps:$4 sm:$0xff]  }
  0x2b   : > { %709 = vmatpush1.bf16.msra.mxu0 %v1668_v32 }
  0x2c   : > { %922 = vmatpush1.bf16.msra.mxu1 %v1669_v33  ;;  %710 = vmatprep.subr.bf16.mxu0 %v1670_v34  ;;  %v1708_v33 = vld [vmem:[%s2315_s4 + $0x94] ss:$8 sps:$4 sm:$0xff]   ;;  %v320_v34 = vadd.f32 %v312_v62, %v300_v20 }
  0x2d   : > { %923 = vmatprep.subr.bf16.mxu1 %v1672_v35  ;;  %v299_v35 = vmul.f32 %v288_v56, %v279_v24  ;;  %v366_v24 = vand.u32 15, %v2034_v29 }
  0x2e   : > { %vm330_vm10 = vcmp.ge.f32.partialorder %v320_v34, 0.0 }
  0x2f   : > { %711 = vmatpush2.bf16.msra.mxu0 %v1674_v37  ;;  %v319_v53 = vadd.f32 %v2000_v7, %v299_v35  ;;  %vm433_vm15 = vcmp.ne.s32.totalorder %v366_v24, 15 }
  0x30   : > { %924 = vmatpush2.bf16.msra.mxu1 %v1675_v38  ;;  %712 = vmatprep.subr.bf16.mxu0 %v1676_v39 }
  0x31   : > { %925 = vmatprep.subr.bf16.mxu1 %v1678_v40  ;;  %v1710_v40 = vld [vmem:[%s2315_s4 + $0x190] ss:$8 sps:$4 sm:$0xff]   ;;  %vm329_vm13 = vcmp.ge.f32.partialorder %v319_v53, 0.0 }
  0x33   : > { %713 = vmatpush2.bf16.msra.mxu0 %v1680_v42  ;;  %v1711_v42 = vld [vmem:[%s2315_s4 + $0x90] ss:$8 sps:$4 sm:$0xff]  }
  0x34   : > { %926 = vmatpush2.bf16.msra.mxu1 %v1681_v43  ;;  %714 = vmatprep.subr.bf16.mxu0 %v1682_v44 }
  0x35   : > { %927 = vmatprep.subr.bf16.mxu1 %v1684_v45  ;;  %v1724_v45 = vld [vmem:[%s2315_s4 + $0x250] ss:$8 sps:$4 sm:$0xff]  }
  0x37   : > { %715 = vmatpush2.bf16.msra.mxu0 %v1686_v47  ;;  %v1714_v47 = vld [vmem:[%s2315_s4 + $0x84] ss:$8 sps:$4 sm:$0xff]  }
  0x38   : > { %928 = vmatpush2.bf16.msra.mxu1 %v1687_v50  ;;  %716 = vmatprep.subr.bf16.mxu0 %v1688_v51 }
  0x39   : > { %929 = vmatprep.subr.bf16.mxu1 %v1690_v52 }
  0x3b   : > { %717 = vmatpush2.bf16.msra.mxu0 %v1692_v55 }
  0x3c   : > { %930 = vmatpush2.bf16.msra.mxu1 %v1693_v57  ;;  %718 = vmatprep.subr.bf16.mxu0 %v1694_v58 }
  0x3d   : > { %931 = vmatprep.subr.bf16.mxu1 %v1696_v0 }
  0x3f   : > { %719 = vmatpush2.bf16.msra.mxu0 %v1698_v10  ;;  %s1612_s7 = spop %1611 }
  0x40   : > { %932 = vmatpush2.bf16.msra.mxu1 %v1699_v14  ;;  %720 = vmatprep.subr.bf16.mxu0 %v1700_v17  ;;  %v333_v32 = vstv %s1612_s7 }
  0x41   : > { %933 = vmatprep.subr.bf16.mxu1 %v1702_v18  ;;  %v335_v36 = vmul.f32 %v333_v32, %v316_v15  ;;  %v337_v37 = vmul.f32 %v333_v32, %v318_v16  ;;  %v341_v38 = vmul.f32 %v333_v32, %v322_v19  ;;  %v340_v39 = vmul.f32 %v333_v32, %v321_v21  ;;  %v1718_v18 = vld [vmem:[%s2315_s4 + $0x270] ss:$8 sps:$4 sm:$0xff]  }
  0x42   : > { %v334_v43 = vmul.f32 %v333_v32, %v315_v27  ;;  %v336_v44 = vmul.f32 %v333_v32, %v317_v28  ;;  %v339_v58 = vmul.f32 %v333_v32, %v320_v34  ;;  %v338_v12 = vmul.f32 %v333_v32, %v319_v53 }
  0x43   : > { %721 = vmatpush2.bf16.msra.mxu0 %v1704_v25  ;;  %v2062_v48 = vsel %vm326_vm3, %v316_v15, %v335_v36  ;;  %v2065_v49 = vsel %vm328_vm4, %v318_v16, %v337_v37  ;;  %v2068_v50 = vsel %vm332_vm5, %v322_v19, %v341_v38  ;;  %v2088_v62 = vsel %vm331_vm6, %v321_v21, %v340_v39  ;;  %v1726_v39 = vld [vmem:[%s2315_s4 + $0x254] ss:$8 sps:$4 sm:$0xff]  }
  0x44   : > { %934 = vmatpush2.bf16.msra.mxu1 %v1705_v26  ;;  %722 = vmatprep.subr.bf16.mxu0 %v1706_v30  ;;  %v408_v51 = vrot.slane %v2062_v48, 7  ;;  %v410_v52 = vrot.slane %v2065_v49, 7  ;;  %v498_v55 = vpack.c.bf16 %v2065_v49, %v2062_v48  ;;  %v414_v56 = vrot.slane %v2068_v50, 7 }
  0x45   : > { %935 = vmatprep.subr.bf16.mxu1 %v1708_v33  ;;  %v342_v57 = vsel %vm325_vm7, %v315_v27, %v334_v43  ;;  %v2085_v61 = vsel %vm327_vm9, %v317_v28, %v336_v44  ;;  %v442_v7 = vrot.slane %v2088_v62, 1  ;;  %v413_v8 = vrot.slane %v2088_v62, 7  ;;  %v1723_v28 = vld [vmem:[%s2315_s4 + $0x264] ss:$8 sps:$4 sm:$0xff]  }
  0x46   : > { %v421_v60 = vsel %vm415_vm1, %v408_v51, %v410_v52  ;;  %v407_v63 = vrot.slane %v342_v57, 7  ;;  %v423_v0 = vsel %vm415_vm1, %v414_v56, %v408_v51  ;;  %v409_v2 = vrot.slane %v2085_v61, 7  ;;  %726 = vmatprep.mubr.bf16.mxu0 %v498_v55  ;;  %v1732_v55 = vld [vmem:[%s2315_s4 + $0x234] ss:$8 sps:$4 sm:$0xff]  }
  0x47   : > { %723 = vmatpush2.bf16.msra.mxu0 %v1710_v40  ;;  %v436_v3 = vrot.slane %v342_v57, 1  ;;  %v438_v4 = vrot.slane %v2085_v61, 1  ;;  %v1486_v6 = vpack.c.bf16 %v421_v60, %v423_v0  ;;  %v347_v11 = vsel %vm330_vm10, %v320_v34, %v339_v58  ;;  %v1733_v58 = vld [vmem:[%s2315_s4 + $0x220] ss:$8 sps:$4 sm:$0xff]   ;;  %v1736_v60 = vld [vmem:[%s2315_s4 + $0x210] ss:$8 sps:$4 sm:$0xff]  }
  0x48   : > { %936 = vmatpush2.bf16.msra.mxu1 %v1711_v42  ;;  %724 = vmatprep.subr.bf16.mxu0 %v1712_v46  ;;  %v420_v10 = vsel %vm415_vm1, %v407_v63, %v409_v2  ;;  %v497_v14 = vpack.c.bf16 %v2085_v61, %v342_v57  ;;  %v422_v15 = vsel %vm415_vm1, %v413_v8, %v407_v63  ;;  %v412_v16 = vrot.slane %v347_v11, 7  ;;  %v1735_v57 = vld [vmem:[%s2315_s4 + $0x224] ss:$8 sps:$4 sm:$0xff]   ;;  %v1744_v63 = vld [vmem:[%s2315_s4 + $0x2f4] ss:$8 sps:$4 sm:$0xff]  }
  0x49   : > { %937 = vmatprep.subr.bf16.mxu1 %v1714_v47  ;;  %v2108_v9 = vsel %vm444_vm2, %v436_v3, %v438_v4  ;;  %1487 = vmatprep.mubr.msk.bf16.mxu1 %vm2095_vm12, %v1486_v6  ;;  %v2117_v13 = vsel %vm444_vm2, %v442_v7, %v436_v3  ;;  %v1489_v17 = vpack.c.bf16 %v420_v10, %v422_v15  ;;  %v437_v25 = vrot.slane %v2062_v48, 1  ;;  %v1741_v61 = vld [vmem:[%s2315_s4 + $0x204] ss:$8 sps:$4 sm:$0xff]   ;;  %v1742_v0 = vld [vmem:[%s2315_s4 + $0x2f0] ss:$8 sps:$4 sm:$0xff]  }
  0x4a   : > { %v500_v19 = vpack.c.bf16 %v2068_v50, %v347_v11  ;;  %v346_v20 = vsel %vm329_vm13, %v319_v53, %v338_v12  ;;  %v417_v21 = vsel %vm415_vm1, %v412_v16, %v414_v56  ;;  %v419_v22 = vsel %vm415_vm1, %v410_v52, %v412_v16  ;;  %v1730_v56 = vld [vmem:[%s2315_s4 + $0x230] ss:$8 sps:$4 sm:$0xff]   ;;  %v1750_v3 = vld [vmem:[%s2315_s4 + $0x2d4] ss:$8 sps:$4 sm:$0xff]   ;;  %v1751_v6 = vld [vmem:[%s2315_s4 + $0x2c0] ss:$8 sps:$4 sm:$0xff]  }
  0x4b   : > { %725 = vmatpush2.bf16.msra.mxu0 %v1716_v54  ;;  %v440_v23 = vrot.slane %v346_v20, 1  ;;  %v1492_v27 = vpack.c.bf16 %v417_v21, %v419_v22  ;;  %v411_v30 = vrot.slane %v346_v20, 7  ;;  %v380_v32 = vand.u32 15, %v2040_v31  ;;  %v1721_v31 = vld [vmem:[%s2315_s4 + $0x260] ss:$8 sps:$4 sm:$0xff]  }
  0x4c   : > { %938 = vmatpush2.bf16.msra.mxu1 %v1717_v59  ;;  %1157 = vmatprep.subr.bf16.mxu0 %v1720_v5  ;;  %v439_v33 = vrot.slane %v2065_v49, 1  ;;  %v441_v29 = vrot.slane %v347_v11, 1  ;;  %v443_v36 = vrot.slane %v2068_v50, 1  ;;  %v499_v48 = vpack.c.bf16 %v2088_v62, %v346_v20  ;;  %v1727_v54 = vld [vmem:[%s2315_s4 + $0x240] ss:$8 sps:$4 sm:$0xff]  }
  0x4d   : > { %1579 = vmatprep.subr.bf16.mxu1 %v1720_v5  ;;  %v2149_v34 = vsel %vm444_vm2, %v440_v23, %v442_v7  ;;  %v2153_v35 = vsel %vm444_vm2, %v438_v4, %v440_v23  ;;  %v416_v40 = vsel %vm415_vm1, %v411_v30, %v413_v8  ;;  %v418_v42 = vsel %vm415_vm1, %v409_v2, %v411_v30  ;;  %vm2185_vm1 = vmpackc.low %vm433_vm15, %vm1774_vm11  ;;  %v1738_v59 = vld [vmem:[%s2315_s4 + $0x214] ss:$8 sps:$4 sm:$0xff]   ;;  %v1739_v62 = vld [vmem:[%s2315_s4 + $0x200] ss:$8 sps:$4 sm:$0xff]  }
  0x4e   : > { %727 = vmatmul.mubr.bf16.vlgmr.msra.gmra.mxu0 %v497_v14  ;;  %v1565_v37 = vpack.c.bf16 %v2153_v35, %v2108_v9  ;;  %v1571_v38 = vpack.c.bf16 %v2117_v13, %v2149_v34  ;;  %v448_v43 = vsel %vm444_vm2, %v439_v33, %v441_v29  ;;  %v450_v44 = vsel %vm444_vm2, %v437_v25, %v439_v33  ;;  %v1745_v2 = vld [vmem:[%s2315_s4 + $0x2e0] ss:$8 sps:$4 sm:$0xff]   ;;  %v1748_v4 = vld [vmem:[%s2315_s4 + $0x2d0] ss:$8 sps:$4 sm:$0xff]   ;;  %v1753_v5 = vld [vmem:[%s2315_s4 + $0x2c4] ss:$8 sps:$4 sm:$0xff]  }
  0x4f   : > { %1490 = vmatmul.mubr.msk.bf16.vlgmr.msra.gmra.mxu1 %vm2095_vm12, %v1489_v17  ;;  %736 = vmatprep.mubr.bf16.mxu0 %v500_v19  ;;  %vm435_vm0 = vcmp.ne.s32.totalorder %v380_v32, 15  ;;  %v446_v46 = vsel %vm444_vm2, %v441_v29, %v443_v36  ;;  %v452_v47 = vsel %vm444_vm2, %v443_v36, %v437_v25  ;;  %v1495_v49 = vpack.c.bf16 %v416_v40, %v418_v42  ;;  %v1756_v7 = vld [vmem:[%s2315_s4 + $0x2b4] ss:$8 sps:$4 sm:$0xff]   ;;  %v1754_v8 = vld [vmem:[%s2315_s4 + $0x2b0] ss:$8 sps:$4 sm:$0xff]  }
  0x50   : > { %1158 = vmatpush1.bf16.msra.mxu0 %v1718_v18  ;;  %1595 = vmatpush1.bf16.msra.mxu1 %v1718_v18  ;;  %v1562_v51 = vpack.c.bf16 %v448_v43, %v450_v44  ;;  %vm2190_vm3 = vmpackc.low %vm435_vm0, %vm1774_vm11  ;;  %v1568_v53 = vpack.c.bf16 %v452_v47, %v446_v46  ;;  %v1759_v10 = vld [vmem:[%s2315_s4 + $0x2a4] ss:$8 sps:$4 sm:$0xff]   ;;  %v1757_v11 = vld [vmem:[%s2315_s4 + $0x2a0] ss:$8 sps:$4 sm:$0xff]   ;;  %vm1270_vm2 = vcmask 1040384  }
  0x51   : > { %1493 = vmatprep.mubr.msk.bf16.mxu1 %vm2136_vm14, %v1492_v27  ;;  %1159 = vmatprep.subr.bf16.mxu0 %v1723_v28  ;;  %v1762_v12 = vld [vmem:[%s2315_s4 + $0x294] ss:$8 sps:$4 sm:$0xff]   ;;  %v1760_v14 = vld [vmem:[%s2315_s4 + $0x290] ss:$8 sps:$4 sm:$0xff]   ;;  %v1765_v15 = vld [vmem:[%s2315_s4 + $0x284] ss:$8 sps:$4 sm:$0xff]  }
  0x52   : > { %1580 = vmatprep.subr.bf16.mxu1 %v1723_v28  ;;  %v1763_v16 = vld [vmem:[%s2315_s4 + $0x280] ss:$8 sps:$4 sm:$0xff]  }
  0x54   : > { %1160 = vmatpush1.bf16.msra.mxu0 %v1721_v31  ;;  %1596 = vmatpush1.bf16.msra.mxu1 %v1721_v31 }
  0x55   : > { %1161 = vmatprep.subr.bf16.mxu0 %v1726_v39  ;;  %1581 = vmatprep.subr.bf16.mxu1 %v1726_v39 }
  0x56   : > { %737 = vmatmul.mubr.bf16.gmra.mxu0 %v499_v48 }
  0x57   : > { %1496 = vmatmul.mubr.msk.bf16.gmra.mxu1 %vm2136_vm14, %v1495_v49  ;;  %1563 = vmatprep.mubr.msk.bf16.mxu0 %vm2185_vm1, %v1562_v51 }
  0x58   : > { %1162 = vmatpush1.bf16.msra.mxu0 %v1724_v45  ;;  %1597 = vmatpush1.bf16.msra.mxu1 %v1724_v45 }
  0x59   : > { %1569 = vmatprep.mubr.msk.bf16.mxu1 %vm2190_vm3, %v1568_v53  ;;  %1163 = vmatprep.subr.bf16.mxu0 %v1729_v41 }
  0x5a   : > { %1582 = vmatprep.subr.bf16.mxu1 %v1729_v41 }
  0x5c   : > { %1164 = vmatpush1.bf16.msra.mxu0 %v1727_v54  ;;  %1598 = vmatpush1.bf16.msra.mxu1 %v1727_v54 }
  0x5d   : > { %1165 = vmatprep.subr.bf16.mxu0 %v1732_v55  ;;  %1583 = vmatprep.subr.bf16.mxu1 %v1732_v55 }
  0x60   : > { %1166 = vmatpush1.bf16.msra.mxu0 %v1730_v56  ;;  %1599 = vmatpush1.bf16.msra.mxu1 %v1730_v56 }
  0x61   : > { %1167 = vmatprep.subr.bf16.mxu0 %v1735_v57  ;;  %1584 = vmatprep.subr.bf16.mxu1 %v1735_v57 }
  0x64   : > { %1168 = vmatpush1.bf16.msra.mxu0 %v1733_v58  ;;  %1600 = vmatpush1.bf16.msra.mxu1 %v1733_v58 }
  0x65   : > { %1169 = vmatprep.subr.bf16.mxu0 %v1738_v59  ;;  %1585 = vmatprep.subr.bf16.mxu1 %v1738_v59 }
  0x68   : > { %1170 = vmatpush1.bf16.msra.mxu0 %v1736_v60  ;;  %1601 = vmatpush1.bf16.msra.mxu1 %v1736_v60 }
  0x69   : > { %1171 = vmatprep.subr.bf16.mxu0 %v1741_v61  ;;  %1586 = vmatprep.subr.bf16.mxu1 %v1741_v61 }
  0x6c   : > { %1172 = vmatpush1.bf16.msra.mxu0 %v1739_v62  ;;  %1602 = vmatpush1.bf16.msra.mxu1 %v1739_v62 }
  0x6d   : > { %1173 = vmatprep.subr.bf16.mxu0 %v1744_v63  ;;  %1587 = vmatprep.subr.bf16.mxu1 %v1744_v63 }
  0x70   : > { %1174 = vmatpush2.bf16.msra.mxu0 %v1742_v0  ;;  %1603 = vmatpush2.bf16.msra.mxu1 %v1742_v0 }
  0x71   : > { %1175 = vmatprep.subr.bf16.mxu0 %v1747_v1  ;;  %1588 = vmatprep.subr.bf16.mxu1 %v1747_v1 }
  0x74   : > { %1176 = vmatpush2.bf16.msra.mxu0 %v1745_v2  ;;  %1604 = vmatpush2.bf16.msra.mxu1 %v1745_v2 }
  0x75   : > { %1177 = vmatprep.subr.bf16.mxu0 %v1750_v3  ;;  %1589 = vmatprep.subr.bf16.mxu1 %v1750_v3 }
  0x78   : > { %1178 = vmatpush2.bf16.msra.mxu0 %v1748_v4  ;;  %1605 = vmatpush2.bf16.msra.mxu1 %v1748_v4 }
  0x79   : > { %1179 = vmatprep.subr.bf16.mxu0 %v1753_v5  ;;  %1590 = vmatprep.subr.bf16.mxu1 %v1753_v5 }
  0x7c   : > { %1180 = vmatpush2.bf16.msra.mxu0 %v1751_v6  ;;  %1606 = vmatpush2.bf16.msra.mxu1 %v1751_v6 }
  0x7d   : > { %1181 = vmatprep.subr.bf16.mxu0 %v1756_v7  ;;  %1591 = vmatprep.subr.bf16.mxu1 %v1756_v7 }
  0x80   : > { %1182 = vmatpush2.bf16.msra.mxu0 %v1754_v8  ;;  %1607 = vmatpush2.bf16.msra.mxu1 %v1754_v8 }
  0x81   : > { %1183 = vmatprep.subr.bf16.mxu0 %v1759_v10  ;;  %1592 = vmatprep.subr.bf16.mxu1 %v1759_v10 }
  0x84   : > { %1184 = vmatpush2.bf16.msra.mxu0 %v1757_v11  ;;  %1608 = vmatpush2.bf16.msra.mxu1 %v1757_v11 }
  0x85   : > { %1185 = vmatprep.subr.bf16.mxu0 %v1762_v12  ;;  %1593 = vmatprep.subr.bf16.mxu1 %v1762_v12 }
  0x88   : > { %1186 = vmatpush2.bf16.msra.mxu0 %v1760_v14  ;;  %1609 = vmatpush2.bf16.msra.mxu1 %v1760_v14 }
  0x89   : > { %1187 = vmatprep.subr.bf16.mxu0 %v1765_v15  ;;  %1594 = vmatprep.subr.bf16.mxu1 %v1765_v15 }
  0x8c   : > { %1188 = vmatpush2.bf16.msra.mxu0 %v1763_v16  ;;  %1610 = vmatpush2.bf16.msra.mxu1 %v1763_v16 }
  0x8f   : > { %1566 = vmatmul.mubr.msk.bf16.vlgmr.msra.gmra.mxu0 %vm2185_vm1, %v1565_v37  ;;  %1572 = vmatmul.mubr.msk.bf16.vlgmr.msra.gmra.mxu1 %vm2190_vm3, %v1571_v38 }
 0x10e   : > { %v728_v17 = vpop.f32.mrf.mxu0 }
 0x10f   : > { %v941_v18 = vpop.f32.mrf.mxu1 }
 0x110   : > { %v730_v19 = vpop.f32.mrf.mxu0  ;;  %v942_v13 = vadd.f32 %v941_v18, %v728_v17 }
 0x111   : > { %v943_v20 = vpop.f32.mrf.mxu1 }
 0x112   : > { %v732_v21 = vpop.f32.mrf.mxu0  ;;  %v944_v34 = vadd.f32 %v943_v20, %v730_v19 }
 0x113   : > { %v945_v22 = vpop.f32.mrf.mxu1 }
 0x114   : > { %v734_v23 = vpop.f32.mrf.mxu0  ;;  %v946_v38 = vadd.f32 %v945_v22, %v732_v21 }
 0x115   : > { %v947_v24 = vpop.f32.mrf.mxu1 }
 0x116   : > { %v738_v25 = vpop.f32.mrf.mxu0  ;;  %v948_v46 = vadd.f32 %v947_v24, %v734_v23 }
 0x117   : > { %v951_v9 = vpop.f32.mrf.mxu1 }
 0x118   : > { %v740_v26 = vpop.f32.mrf.mxu0  ;;  %v952_v31 = vadd.f32 %v951_v9, %v738_v25 }
 0x119   : > { %v953_v27 = vpop.f32.mrf.mxu1 }
 0x11a   : > { %v742_v28 = vpop.f32.mrf.mxu0  ;;  %v954_v42 = vadd.f32 %v953_v27, %v740_v26 }
 0x11b   : > { %v955_v30 = vpop.f32.mrf.mxu1 }
 0x11c   : > { %v744_v32 = vpop.f32.mrf.mxu0  ;;  %v956_v43 = vadd.f32 %v955_v30, %v742_v28 }
 0x11d   : > { %v957_v33 = vpop.f32.mrf.mxu1 }
 0x11e   : > { %v958_v49 = vadd.f32 %v957_v33, %v744_v32 }
 0x14f   : > { %v1191_v29 = vpop.f32.mrf.mxu0  ;;  %v1201_v36 = vpop.f32.mrf.mxu1 }
 0x150   : > { %v1210_v35 = vadd.f32 %v1191_v29, %v942_v13  ;;  %v1214_v44 = vadd.f32 %v1201_v36, %v952_v31 }
 0x151   : > { %v1193_v37 = vpop.f32.mrf.mxu0  ;;  %v1203_v40 = vpop.f32.mrf.mxu1 }
 0x152   : > { %1218 = vst [vmem:[%s2293_s9] sm:$0xff] %v1210_v35  ;;  %v1211_v39 = vadd.f32 %v1193_v37, %v944_v34  ;;  %v1215_v50 = vadd.f32 %v1203_v40, %v954_v42  ;;  %v1244_v41 = vmul.f32 %v1210_v35, %v1210_v35  ;;  %v1248_v57 = vmul.f32 %v1214_v44, %v1214_v44 }
 0x153   : > { %v1195_v45 = vpop.f32.mrf.mxu0  ;;  %v1205_v48 = vpop.f32.mrf.mxu1  ;;  %1222 = vst [vmem:[%s2293_s9 + $0x20] sm:$0xff] %v1214_v44 }
 0x154   : > { %1219 = vst [vmem:[%s2293_s9 + $0x8] sm:$0xff] %v1211_v39  ;;  %v1212_v47 = vadd.f32 %v1195_v45, %v946_v38  ;;  %v1216_v51 = vadd.f32 %v1205_v48, %v956_v43  ;;  %v1245_v58 = vmul.f32 %v1211_v39, %v1211_v39  ;;  %v1249_v0 = vmul.f32 %v1215_v50, %v1215_v50 }
 0x155   : > { %v1197_v52 = vpop.f32.mrf.mxu0  ;;  %v1207_v56 = vpop.f32.mrf.mxu1  ;;  %1223 = vst [vmem:[%s2293_s9 + $0x28] sm:$0xff] %v1215_v50 }
 0x156   : > { %1220 = vst [vmem:[%s2293_s9 + $0x10] sm:$0xff] %v1212_v47  ;;  %v1226_v53 = vadd.f32 %v1212_v47, %v1210_v35  ;;  %v1246_v54 = vmul.f32 %v1212_v47, %v1212_v47  ;;  %v1213_v55 = vadd.f32 %v1197_v52, %v948_v46  ;;  %v1217_v59 = vadd.f32 %v1207_v56, %v958_v49 }
 0x157   : > { %1224 = vst [vmem:[%s2293_s9 + $0x30] sm:$0xff] %v1216_v51  ;;  %v1250_v1 = vmul.f32 %v1216_v51, %v1216_v51 }
 0x158   : > { %v1252_v60 = vadd.f32 %v1246_v54, %v1244_v41  ;;  %v1227_v61 = vadd.f32 %v1226_v53, %v1214_v44  ;;  %1221 = vst [vmem:[%s2293_s9 + $0x18] sm:$0xff] %v1213_v55  ;;  %v1235_v62 = vadd.f32 %v1213_v55, %v1211_v39  ;;  %v1247_v63 = vmul.f32 %v1213_v55, %v1213_v55 }
 0x159   : > { %1225 = vst [vmem:[%s2293_s9 + $0x38] sm:$0xff] %v1217_v59  ;;  %v1251_v6 = vmul.f32 %v1217_v59, %v1217_v59 }
 0x15a   : > { %v1228_v2 = vadd.f32 %v1227_v61, %v1216_v51  ;;  %v1253_v3 = vadd.f32 %v1252_v60, %v1248_v57  ;;  %v1261_v4 = vadd.f32 %v1247_v63, %v1245_v58  ;;  %v1236_v5 = vadd.f32 %v1235_v62, %v1215_v50 }
 0x15c   : > { %v1229_v7 = vrot.slane %v1228_v2, 4  ;;  %v1254_v8 = vadd.f32 %v1253_v3, %v1250_v1  ;;  %v1237_v10 = vadd.f32 %v1236_v5, %v1217_v59  ;;  %v1262_v11 = vadd.f32 %v1261_v4, %v1249_v0 }
 0x15e   : > { %v1230_v12 = vadd.f32 %v1229_v7, %v1228_v2  ;;  %v1255_v14 = vrot.slane %v1254_v8, 4  ;;  %v1238_v15 = vrot.slane %v1237_v10, 4  ;;  %v1263_v16 = vadd.f32 %v1262_v11, %v1251_v6 }
 0x160   : > { %v1231_v17 = vrot.slane %v1230_v12, 2  ;;  %v1256_v18 = vadd.f32 %v1255_v14, %v1254_v8  ;;  %v1239_v19 = vadd.f32 %v1238_v15, %v1237_v10  ;;  %v1264_v20 = vrot.slane %v1263_v16, 4 }
 0x162   : > { %v1232_v21 = vadd.f32 %v1231_v17, %v1230_v12  ;;  %v1257_v22 = vrot.slane %v1256_v18, 2  ;;  %v1240_v23 = vrot.slane %v1239_v19, 2  ;;  %v1265_v24 = vadd.f32 %v1264_v20, %v1263_v16 }
 0x164   : > { %v1258_v25 = vadd.f32 %v1257_v22, %v1256_v18  ;;  %v1241_v9 = vadd.f32 %v1240_v23, %v1239_v19  ;;  %v1266_v26 = vrot.slane %v1265_v24, 2  ;;  %v1233_v27 = vrot.slane %v1232_v21, 1 }
 0x166   : > { %v1259_v28 = vrot.slane %v1258_v25, 1  ;;  %v1242_v30 = vrot.slane %v1241_v9, 1  ;;  %v1267_v32 = vadd.f32 %v1266_v26, %v1265_v24  ;;  %v1234_v29 = vadd.f32 %v1233_v27, %v1232_v21 }
 0x168   : > { %v1260_v13 = vadd.f32 %v1259_v28, %v1258_v25  ;;  %v1268_v33 = vrot.slane %v1267_v32, 1  ;;  %v1243_v34 = vadd.f32 %v1242_v30, %v1241_v9 }
 0x16a   : > { %v1269_v35 = vadd.f32 %v1268_v33, %v1267_v32  ;;  %v1271_v36 = vsel %vm1270_vm2, %v1234_v29, %v1260_v13 }
 0x16c   : > { %v1272_v31 = vsel %vm1270_vm2, %v1243_v34, %v1269_v35 }
 0x16d   : > { %v1275_v37 = vcombine.low %v1271_v36, %v1272_v31 }
 0x16f   : > { %1573 = vst.sshfl [vmem:[%s274_s10] sm:$0x33 pattern:$0x76325410] %v1275_v37 }
 0x170 PF: > { %s19_s23 = sadd.s32 1, %s1772_s23  }
 0x171   : > { %p16_p5 = scmp.ge.s32.totalorder %s19_s23, 4  }
 0x173   :  { %18 = sbr.rel (!%p16_p5) target bundleno = 3 (0x3), region = 84 }

</bundles_post_ra>
